<compile_context>
chip_gen: v7x
topology: tpu7x:2x2x1
jax: 0.10.0
libtpu: 0.0.40
codegen_flags: <defaults>
</compile_context>

<pallas_src>
import functools

import jax
import jax.numpy as jnp
from jax.experimental import pallas as pl
from jax.experimental.pallas import tpu as pltpu


def _round_up(x, m):
    return ((x + m - 1) // m) * m


# ----------------------------- Pallas kernels ------------------------------ #

def _encoder_gru_kernel(x_ref, wih_ref, whh_ref, bih_ref, bhh_ref, h_ref, gx_scr):
    """GRU over the full source sequence.

    x_ref:   (L*Bp, Ep)   time-major embedded source, flattened over (time, batch)
    wih_ref: (Ep, 3*Hp)   concatenated input->hidden weights, gate order [r|z|n]
    whh_ref: (Hp, 3*Hp)   concatenated hidden->hidden weights
    bih_ref: (1, 3*Hp)    input biases
    bhh_ref: (1, 3*Hp)    hidden biases
    h_ref:   (Bp, Hp)     output = final hidden state
    gx_scr:  (L*Bp, 3*Hp) scratch for the hoisted input projection
    """
    LB, _ = x_ref.shape
    Bp, Hp = h_ref.shape
    L = LB // Bp

    # Hoist the input->hidden projection out of the serial recurrence:
    # one big MXU matmul for all timesteps.
    gx_scr[...] = (jnp.dot(x_ref[...], wih_ref[...],
                           preferred_element_type=jnp.float32) + bih_ref[...])

    whh = whh_ref[...]
    bhh = bhh_ref[...]

    def step(t, h):
        row = pl.multiple_of(t * Bp, Bp)
        gx = gx_scr[pl.ds(row, Bp), :]                               # (Bp, 3Hp)
        gh = jnp.dot(h, whh, preferred_element_type=jnp.float32) + bhh
        r = jax.nn.sigmoid(gx[:, :Hp] + gh[:, :Hp])
        z = jax.nn.sigmoid(gx[:, Hp:2 * Hp] + gh[:, Hp:2 * Hp])
        n = jnp.tanh(gx[:, 2 * Hp:] + r * gh[:, 2 * Hp:])
        return (1.0 - z) * n + z * h

    h_ref[...] = jax.lax.fori_loop(0, L, step,
                                   jnp.zeros((Bp, Hp), jnp.float32),
                                   unroll=True)


def _decoder_seq_kernel(tf_ref, h0_ref, trg_emb_ref, dec_emb_ref,
                        wih_ref, whh_ref, bih_ref, bhh_ref,
                        wfc_ref, bfc_ref, out_ref, h_scr, pred_scr):
    """One fused pallas_call over all decoder steps (grid axis = step, 'arbitrary').

    tf_ref:      (S,) int32 SMEM   teacher-forcing flags (scalar prefetch)
    h0_ref:      (Bp, Hp)          encoder final hidden state
    trg_emb_ref: (1, Bp, Ep)       teacher-forced token embedding for this step
    dec_emb_ref: (Vp, Ep)          decoder embedding matrix (for greedy feedback)
    wih_ref:     (Ep, 3*Hp), whh_ref: (Hp, 3*Hp), bih/bhh: (1, 3*Hp)
    wfc_ref:     (Hp, Vp), bfc_ref: (1, Vp)  (padded vocab cols biased to -1e30)
    out_ref:     (1, Bp, Vp)       logits for this step
    h_scr:       (Bp, Hp)  VMEM    hidden state carried across steps
    pred_scr:    (Bp, Ep)  VMEM    embedding of previous step's argmax token
    """
    s = pl.program_id(0)
    _, Hp = h_scr.shape
    Vp = bfc_ref.shape[-1]

    @pl.when(s == 0)
    def _():
        h_scr[...] = h0_ref[...]
        pred_scr[...] = jnp.zeros_like(pred_scr)

    # Step input: teacher-forced trg embedding vs. previous step's greedy embedding.
    use_tf = jnp.logical_or(s == 0, tf_ref[s] != 0).astype(jnp.float32)
    x = use_tf * trg_emb_ref[0] + (1.0 - use_tf) * pred_scr[...]     # (Bp, Ep)
    h = h_scr[...]

    gx = jnp.dot(x, wih_ref[...], preferred_element_type=jnp.float32) + bih_ref[...]
    gh = jnp.dot(h, whh_ref[...], preferred_element_type=jnp.float32) + bhh_ref[...]

    r = jax.nn.sigmoid(gx[:, :Hp] + gh[:, :Hp])
    z = jax.nn.sigmoid(gx[:, Hp:2 * Hp] + gh[:, Hp:2 * Hp])
    n = jnp.tanh(gx[:, 2 * Hp:] + r * gh[:, 2 * Hp:])
    h_new = (1.0 - z) * n + z * h
    h_scr[...] = h_new

    logits = (jnp.dot(h_new, wfc_ref[...], preferred_element_type=jnp.float32)
              + bfc_ref[...])                                        # (Bp, Vp)
    out_ref[0] = logits

    # Greedy feedback for the next step: first-argmax -> one-hot -> embedding row.
    col = jax.lax.broadcasted_iota(jnp.int32, logits.shape, 1)
    m = jnp.max(logits, axis=1, keepdims=True)
    idx = jnp.min(jnp.where(logits == m, col, Vp), axis=1, keepdims=True)
    one_hot = (col == idx).astype(jnp.float32)
    pred_scr[...] = jnp.dot(one_hot, dec_emb_ref[...],
                            preferred_element_type=jnp.float32)


# ------------------------------ Wrappers ----------------------------------- #

def encoder_forward(x2d, batch_p, wih, whh, bih, bhh):
    LB, Ep = x2d.shape
    Hp, H3 = whh.shape
    return pl.pallas_call(
        _encoder_gru_kernel,
        out_shape=jax.ShapeDtypeStruct((batch_p, Hp), jnp.float32),
        grid=(1,),
        in_specs=[
            pl.BlockSpec((LB, Ep), lambda i: (0, 0)),
            pl.BlockSpec((Ep, H3), lambda i: (0, 0)),
            pl.BlockSpec((Hp, H3), lambda i: (0, 0)),
            pl.BlockSpec((1, H3), lambda i: (0, 0)),
            pl.BlockSpec((1, H3), lambda i: (0, 0)),
        ],
        out_specs=pl.BlockSpec((batch_p, Hp), lambda i: (0, 0)),
        scratch_shapes=[pltpu.VMEM((LB, H3), jnp.float32)],
        compiler_params=pltpu.CompilerParams(dimension_semantics=("arbitrary",)),
    )(x2d, wih, whh, bih, bhh)


def decoder_forward(tf_flags, h0, trg_emb_tm, dec_emb, wih, whh, bih, bhh, wfc, bfc):
    S, Bp, Ep = trg_emb_tm.shape
    Hp, H3 = whh.shape
    Vp = wfc.shape[1]
    Vemb = dec_emb.shape[0]

    grid_spec = pltpu.PrefetchScalarGridSpec(
        num_scalar_prefetch=1,
        grid=(S,),
        in_specs=[
            pl.BlockSpec((Bp, Hp), lambda s, tf: (0, 0)),        # h0
            pl.BlockSpec((1, Bp, Ep), lambda s, tf: (s, 0, 0)),  # per-step trg emb
            pl.BlockSpec((Vemb, Ep), lambda s, tf: (0, 0)),      # dec embedding
            pl.BlockSpec((Ep, H3), lambda s, tf: (0, 0)),        # wih (resident)
            pl.BlockSpec((Hp, H3), lambda s, tf: (0, 0)),        # whh (resident)
            pl.BlockSpec((1, H3), lambda s, tf: (0, 0)),         # bih
            pl.BlockSpec((1, H3), lambda s, tf: (0, 0)),         # bhh
            pl.BlockSpec((Hp, Vp), lambda s, tf: (0, 0)),        # wfc (resident)
            pl.BlockSpec((1, Vp), lambda s, tf: (0, 0)),         # bfc
        ],
        out_specs=pl.BlockSpec((1, Bp, Vp), lambda s, tf: (s, 0, 0)),
        scratch_shapes=[pltpu.VMEM((Bp, Hp), jnp.float32),
                        pltpu.VMEM((Bp, Ep), jnp.float32)],
    )
    return pl.pallas_call(
        _decoder_seq_kernel,
        out_shape=jax.ShapeDtypeStruct((S, Bp, Vp), jnp.float32),
        grid_spec=grid_spec,
        compiler_params=pltpu.CompilerParams(dimension_semantics=("arbitrary",)),
    )(tf_flags, h0, trg_emb_tm, dec_emb, wih, whh, bih, bhh, wfc, bfc)


# ----------------------- Param prep (pad + fuse gates) ---------------------- #

def _pad2(x, rows, cols):
    return jnp.zeros((rows, cols), x.dtype).at[:x.shape[0], :x.shape[1]].set(x)


def _cat_gates_w(w3, in_p, h_p):
    # w3: (3, In, H) -> (in_p, 3*h_p), gate order [r|z|n], each gate padded to h_p.
    In, H = w3.shape[1], w3.shape[2]
    out = jnp.zeros((in_p, 3 * h_p), w3.dtype)
    for g in range(3):
        out = out.at[:In, g * h_p:g * h_p + H].set(w3[g])
    return out


def _cat_gates_b(b3, h_p):
    # b3: (3, 1, H) -> (1, 3*h_p)
    H = b3.shape[-1]
    out = jnp.zeros((1, 3 * h_p), b3.dtype)
    for g in range(3):
        out = out.at[:, g * h_p:g * h_p + H].set(b3[g])
    return out


def prepare_kernel_params(params):
    E = params["enc_wih"].shape[1]
    H = params["enc_whh"].shape[-1]
    V = params["dec_wfc"].shape[-1]
    Ep, Hp, Vp = _round_up(E, 128), _round_up(H, 128), _round_up(V, 128)
    kp = {
        "E": E, "H": H, "V": V, "Ep": Ep, "Hp": Hp, "Vp": Vp,
        "enc_emb": _pad2(params["enc_emb"], params["enc_emb"].shape[0], Ep),
        "enc_wih": _cat_gates_w(params["enc_wih"], Ep, Hp),
        "enc_whh": _cat_gates_w(params["enc_whh"], Hp, Hp),
        "enc_bih": _cat_gates_b(params["enc_bih"], Hp),
        "enc_bhh": _cat_gates_b(params["enc_bhh"], Hp),
        "dec_emb": _pad2(params["dec_emb"], Vp, Ep),
        "dec_wih": _cat_gates_w(params["dec_wih"], Ep, Hp),
        "dec_whh": _cat_gates_w(params["dec_whh"], Hp, Hp),
        "dec_bih": _cat_gates_b(params["dec_bih"], Hp),
        "dec_bhh": _cat_gates_b(params["dec_bhh"], Hp),
        "dec_wfc": _pad2(params["dec_wfc"], Hp, Vp),
        # padded vocab columns get -1e30 so in-kernel argmax never selects them
        "dec_bfc": jnp.full((1, Vp), -1e30, jnp.float32)
                       .at[:, :V].set(params["dec_bfc"][0]),
    }
    return kp


# ------------------------------ Forward pass -------------------------------- #

def make_tf_flags(key, trg_len, teacher_forcing_ratio):
    # TODO(synk): torch.rand(1).item() is host-side RNG; emulated with a
    # deterministic jax.random key so the forward is reproducible.
    draws = jax.random.uniform(key, (trg_len,))
    return (draws < teacher_forcing_ratio).astype(jnp.int32)


def seq2seq_forward(params, src, trg, tf_flags=None, teacher_forcing_ratio=0.5,
                    tf_key=None):
    """Mirrors Seq2Seq.forward: outputs[:, 0] stays zeros; steps 1..trg_len-1 are
    decoder outputs, with the next input chosen by teacher forcing or argmax."""
    B, trg_len = trg.shape
    L = src.shape[1]
    if tf_flags is None:
        key = tf_key if tf_key is not None else jax.random.PRNGKey(1)
        tf_flags = make_tf_flags(key, trg_len, teacher_forcing_ratio)

    kp = prepare_kernel_params(params)
    Ep, Hp, V = kp["Ep"], kp["Hp"], kp["V"]
    Bp = _round_up(B, 8)

    # ---- Encoder ----
    src_emb = jnp.take(kp["enc_emb"], src, axis=0)             # (B, L, Ep)
    src_emb_tm = jnp.transpose(src_emb, (1, 0, 2))             # (L, B, Ep)
    if Bp != B:
        src_emb_tm = jnp.pad(src_emb_tm, ((0, 0), (0, Bp - B), (0, 0)))
    x2d = src_emb_tm.reshape(L * Bp, Ep)
    hidden = encoder_forward(x2d, Bp, kp["enc_wih"], kp["enc_whh"],
                             kp["enc_bih"], kp["enc_bhh"])     # (Bp, Hp)

    outputs = jnp.zeros((B, trg_len, V), jnp.float32)          # t = 0 stays zero
    S = trg_len - 1
    if S == 0:
        return outputs

    # ---- Decoder (single fused kernel over all steps) ----
    trg_emb = jnp.take(kp["dec_emb"], trg[:, :S].T, axis=0)    # (S, B, Ep)
    if Bp != B:
        trg_emb = jnp.pad(trg_emb, ((0, 0), (0, Bp - B), (0, 0)))
    tf_steps = tf_flags[:S].astype(jnp.int32)

    dec_out = decoder_forward(tf_steps, hidden, trg_emb, kp["dec_emb"],
                              kp["dec_wih"], kp["dec_whh"],
                              kp["dec_bih"], kp["dec_bhh"],
                              kp["dec_wfc"], kp["dec_bfc"])    # (S, Bp, Vp)

    outputs = outputs.at[:, 1:, :].set(
        jnp.transpose(dec_out[:, :B, :V], (1, 0, 2)))
    return outputs


# --------------------------- Pure-JAX reference ------------------------------ #

def seq2seq_reference(params, src, trg, tf_flags):
    B, trg_len = trg.shape
    H = params["enc_whh"].shape[-1]
    V = params["dec_wfc"].shape[-1]

    def cell(x, h, wih, whh, bih, bhh):
        gx = [x @ wih[g] + bih[g] for g in range(3)]
        gh = [h @ whh[g] + bhh[g] for g in range(3)]
        r = jax.nn.sigmoid(gx[0] + gh[0])
        z = jax.nn.sigmoid(gx[1] + gh[1])
        n = jnp.tanh(gx[2] + r * gh[2])
        return (1.0 - z) * n + z * h

    x = jnp.take(params["enc_emb"], src, axis=0)
    h = jnp.zeros((B, H), jnp.float32)
    for t in range(src.shape[1]):
        h = cell(x[:, t], h, params["enc_wih"], params["enc_whh"],
                 params["enc_bih"], params["enc_bhh"])

    outs = [jnp.zeros((B, V), jnp.float32)]
    inp = trg[:, 0]
    for t in range(1, trg_len):
        xe = jnp.take(params["dec_emb"], inp, axis=0)
        h = cell(xe, h, params["dec_wih"], params["dec_whh"],
                 params["dec_bih"], params["dec_bhh"])
        logits = h @ params["dec_wfc"] + params["dec_bfc"]
        outs.append(logits)
        top1 = jnp.argmax(logits, axis=1).astype(trg.dtype)
        inp = jnp.where(tf_flags[t] != 0, trg[:, t], top1)
    return jnp.stack(outs, axis=1)


# ------------------------------ Param init ---------------------------------- #

def init_params(key, src_vocab, trg_vocab, emb_dim, hid_dim):
    ks = jax.random.split(key, 12)
    s = 0.1
    return {
        "enc_emb": s * jax.random.normal(ks[0], (src_vocab, emb_dim), jnp.float32),
        "enc_wih": s * jax.random.normal(ks[1], (3, emb_dim, hid_dim), jnp.float32),
        "enc_whh": s * jax.random.normal(ks[2], (3, hid_dim, hid_dim), jnp.float32),
        "enc_bih": s * jax.random.normal(ks[3], (3, 1, hid_dim), jnp.float32),
        "enc_bhh": s * jax.random.normal(ks[4], (3, 1, hid_dim), jnp.float32),
        "dec_emb": s * jax.random.normal(ks[5], (trg_vocab, emb_dim), jnp.float32),
        "dec_wih": s * jax.random.normal(ks[6], (3, emb_dim, hid_dim), jnp.float32),
        "dec_whh": s * jax.random.normal(ks[7], (3, hid_dim, hid_dim), jnp.float32),
        "dec_bih": s * jax.random.normal(ks[8], (3, 1, hid_dim), jnp.float32),
        "dec_bhh": s * jax.random.normal(ks[9], (3, 1, hid_dim), jnp.float32),
        "dec_wfc": s * jax.random.normal(ks[10], (hid_dim, trg_vocab), jnp.float32),
        "dec_bfc": s * jax.random.normal(ks[11], (1, trg_vocab), jnp.float32),
    }


# --------------------------------- Main ------------------------------------- #

if __name__ == "__main__":
    BATCH = 8
    SRC_LEN = 6
    TRG_LEN = 7
    SRC_VOCAB = 50
    TRG_VOCAB = 64
    EMB = 32
    HID = 32

    root = jax.random.PRNGKey(0)
    k_param, k_src, k_trg = jax.random.split(root, 3)

    params = init_params(k_param, SRC_VOCAB, TRG_VOCAB, EMB, HID)
    src = jax.random.randint(k_src, (BATCH, SRC_LEN), 0, SRC_VOCAB, jnp.int32)
    trg = jax.random.randint(k_trg, (BATCH, TRG_LEN), 0, TRG_VOCAB, jnp.int32)

    tf_flags = make_tf_flags(jax.random.PRNGKey(1), TRG_LEN, 0.5)

    fwd = jax.jit(functools.partial(seq2seq_forward))
    out = fwd(params, src, trg, tf_flags)
    out = jax.block_until_ready(out)

    assert out.shape == (BATCH, TRG_LEN, TRG_VOCAB)
    assert out.dtype == jnp.float32
    assert bool(jnp.all(out[:, 0] == 0.0))   # outputs[:, 0] untouched, as in PyTorch

    ref = seq2seq_reference(params, src, trg, tf_flags)
    maxdiff = float(jnp.max(jnp.abs(out - ref)))
    assert maxdiff < 1e-3, f"kernel/reference mismatch: {maxdiff}"

    print("KERNEL_OK")
</pallas_src>

<mosaic_0001>
module attributes {stable_mosaic.version = 11 : i64} {
  func.func @_encoder_gru_kernel(%arg0: i32, %arg1: memref<48x128xf32, #tpu.memory_space<vmem>>, %arg2: memref<128x384xf32, #tpu.memory_space<vmem>>, %arg3: memref<128x384xf32, #tpu.memory_space<vmem>>, %arg4: memref<1x384xf32, #tpu.memory_space<vmem>>, %arg5: memref<1x384xf32, #tpu.memory_space<vmem>>, %arg6: memref<8x128xf32, #tpu.memory_space<vmem>>, %arg7: memref<48x384xf32, #tpu.memory_space<vmem>>) attributes {dimension_semantics = [#tpu.dimension_semantics<arbitrary>], iteration_bounds = array<i64: 1>, scalar_prefetch = 0 : i64, scratch_operands = 1 : i64, tpu.core_type = #tpu.core_type<tc>, window_params = [{pipeline_mode = #tpu.pipeline_mode<synchronous>, transform_indices = @transform_0, window_bounds = array<i64: 48, 128>}, {pipeline_mode = #tpu.pipeline_mode<synchronous>, transform_indices = @transform_1, window_bounds = array<i64: 128, 384>}, {pipeline_mode = #tpu.pipeline_mode<synchronous>, transform_indices = @transform_2, window_bounds = array<i64: 128, 384>}, {pipeline_mode = #tpu.pipeline_mode<synchronous>, transform_indices = @transform_3, window_bounds = array<i64: 1, 384>}, {pipeline_mode = #tpu.pipeline_mode<synchronous>, transform_indices = @transform_4, window_bounds = array<i64: 1, 384>}, {pipeline_mode = #tpu.pipeline_mode<synchronous>, transform_indices = @transform_5, window_bounds = array<i64: 8, 128>}]} {
    %c0 = arith.constant 0 : index
    %c0_0 = arith.constant 0 : index
    %0 = vector.load %arg1[%c0, %c0_0] : memref<48x128xf32, #tpu.memory_space<vmem>>, vector<48x128xf32>
    %c0_1 = arith.constant 0 : index
    %c0_2 = arith.constant 0 : index
    %1 = vector.load %arg2[%c0_1, %c0_2] : memref<128x384xf32, #tpu.memory_space<vmem>>, vector<128x384xf32>
    %cst = arith.constant dense<0.000000e+00> : vector<48x384xf32>
    %2 = tpu.matmul %0, %1, %cst {dimension_numbers = #tpu.dot_dimension_numbers<[1], [0], [0], [1], [0, 0, 1, 1], [], []>} : vector<48x128xf32>, vector<128x384xf32>, vector<48x384xf32> -> vector<48x384xf32>
    %c0_3 = arith.constant 0 : index
    %c0_4 = arith.constant 0 : index
    %3 = vector.load %arg4[%c0_3, %c0_4] : memref<1x384xf32, #tpu.memory_space<vmem>>, vector<1x384xf32>
    %4 = vector.broadcast %3 : vector<1x384xf32> to vector<48x384xf32>
    %5 = arith.addf %2, %4 : vector<48x384xf32>
    %c0_5 = arith.constant 0 : index
    %c0_6 = arith.constant 0 : index
    %6 = vector.load %arg7[%c0_5, %c0_6] : memref<48x384xf32, #tpu.memory_space<vmem>>, vector<48x384xf32>
    tpu.vector_store %arg7[%c0_5, %c0_6], %5 {strides = array<i32>} : memref<48x384xf32, #tpu.memory_space<vmem>>, vector<48x384xf32>,
    %c0_7 = arith.constant 0 : index
    %c0_8 = arith.constant 0 : index
    %7 = vector.load %arg3[%c0_7, %c0_8] : memref<128x384xf32, #tpu.memory_space<vmem>>, vector<128x384xf32>
    %c0_9 = arith.constant 0 : index
    %c0_10 = arith.constant 0 : index
    %8 = vector.load %arg5[%c0_9, %c0_10] : memref<1x384xf32, #tpu.memory_space<vmem>>, vector<1x384xf32>
    %cst_11 = arith.constant 0.000000e+00 : f32
    %9 = vector.broadcast %cst_11 : f32 to vector<8x128xf32>
    %c0_i32 = arith.constant 0 : i32
    %c8_i32 = arith.constant 8 : i32
    %10 = arith.muli %c0_i32, %c8_i32 : i32
    %11 = tpu.assume_multiple %10, 8 : i32
    %12 = arith.index_cast %11 : i32 to index
    %c0_12 = arith.constant 0 : index
    %13 = vector.load %arg7[%12, %c0_12] : memref<48x384xf32, #tpu.memory_space<vmem>>, vector<8x384xf32>
    %cst_13 = arith.constant dense<0.000000e+00> : vector<8x384xf32>
    %14 = tpu.matmul %9, %7, %cst_13 {dimension_numbers = #tpu.dot_dimension_numbers<[1], [0], [0], [1], [0, 0, 1, 1], [], []>} : vector<8x128xf32>, vector<128x384xf32>, vector<8x384xf32> -> vector<8x384xf32>
    %15 = vector.broadcast %8 : vector<1x384xf32> to vector<8x384xf32>
    %16 = arith.addf %14, %15 : vector<8x384xf32>
    %17 = vector.extract_strided_slice %13 {offsets = [0, 0], sizes = [8, 128], strides = [1, 1]} : vector<8x384xf32> to vector<8x128xf32>
    %18 = vector.extract_strided_slice %16 {offsets = [0, 0], sizes = [8, 128], strides = [1, 1]} : vector<8x384xf32> to vector<8x128xf32>
    %19 = arith.addf %17, %18 : vector<8x128xf32>
    %20 = arith.negf %19 : vector<8x128xf32>
    %21 = math.exp %20 : vector<8x128xf32>
    %cst_14 = arith.constant 1.000000e+00 : f32
    %22 = vector.broadcast %cst_14 : f32 to vector<8x128xf32>
    %23 = arith.addf %22, %21 : vector<8x128xf32>
    %24 = arith.divf %22, %23 : vector<8x128xf32>
    %25 = vector.extract_strided_slice %13 {offsets = [0, 128], sizes = [8, 128], strides = [1, 1]} : vector<8x384xf32> to vector<8x128xf32>
    %26 = vector.extract_strided_slice %16 {offsets = [0, 128], sizes = [8, 128], strides = [1, 1]} : vector<8x384xf32> to vector<8x128xf32>
    %27 = arith.addf %25, %26 : vector<8x128xf32>
    %28 = arith.negf %27 : vector<8x128xf32>
    %29 = math.exp %28 : vector<8x128xf32>
    %cst_15 = arith.constant 1.000000e+00 : f32
    %30 = vector.broadcast %cst_15 : f32 to vector<8x128xf32>
    %31 = arith.addf %30, %29 : vector<8x128xf32>
    %32 = arith.divf %30, %31 : vector<8x128xf32>
    %33 = vector.extract_strided_slice %13 {offsets = [0, 256], sizes = [8, 128], strides = [1, 1]} : vector<8x384xf32> to vector<8x128xf32>
    %34 = vector.extract_strided_slice %16 {offsets = [0, 256], sizes = [8, 128], strides = [1, 1]} : vector<8x384xf32> to vector<8x128xf32>
    %35 = arith.mulf %24, %34 : vector<8x128xf32>
    %36 = arith.addf %33, %35 : vector<8x128xf32>
    %37 = math.tanh %36 : vector<8x128xf32>
    %cst_16 = arith.constant 1.000000e+00 : f32
    %38 = vector.broadcast %cst_16 : f32 to vector<8x128xf32>
    %39 = arith.subf %38, %32 : vector<8x128xf32>
    %40 = arith.mulf %39, %37 : vector<8x128xf32>
    %41 = arith.mulf %32, %9 : vector<8x128xf32>
    %42 = arith.addf %40, %41 : vector<8x128xf32>
    %c1_i32 = arith.constant 1 : i32
    %c8_i32_17 = arith.constant 8 : i32
    %43 = arith.muli %c1_i32, %c8_i32_17 : i32
    %44 = tpu.assume_multiple %43, 8 : i32
    %45 = arith.index_cast %44 : i32 to index
    %c0_18 = arith.constant 0 : index
    %46 = vector.load %arg7[%45, %c0_18] : memref<48x384xf32, #tpu.memory_space<vmem>>, vector<8x384xf32>
    %cst_19 = arith.constant dense<0.000000e+00> : vector<8x384xf32>
    %47 = tpu.matmul %42, %7, %cst_19 {dimension_numbers = #tpu.dot_dimension_numbers<[1], [0], [0], [1], [0, 0, 1, 1], [], []>} : vector<8x128xf32>, vector<128x384xf32>, vector<8x384xf32> -> vector<8x384xf32>
    %48 = vector.broadcast %8 : vector<1x384xf32> to vector<8x384xf32>
    %49 = arith.addf %47, %48 : vector<8x384xf32>
    %50 = vector.extract_strided_slice %46 {offsets = [0, 0], sizes = [8, 128], strides = [1, 1]} : vector<8x384xf32> to vector<8x128xf32>
    %51 = vector.extract_strided_slice %49 {offsets = [0, 0], sizes = [8, 128], strides = [1, 1]} : vector<8x384xf32> to vector<8x128xf32>
    %52 = arith.addf %50, %51 : vector<8x128xf32>
    %53 = arith.negf %52 : vector<8x128xf32>
    %54 = math.exp %53 : vector<8x128xf32>
    %cst_20 = arith.constant 1.000000e+00 : f32
    %55 = vector.broadcast %cst_20 : f32 to vector<8x128xf32>
    %56 = arith.addf %55, %54 : vector<8x128xf32>
    %57 = arith.divf %55, %56 : vector<8x128xf32>
    %58 = vector.extract_strided_slice %46 {offsets = [0, 128], sizes = [8, 128], strides = [1, 1]} : vector<8x384xf32> to vector<8x128xf32>
    %59 = vector.extract_strided_slice %49 {offsets = [0, 128], sizes = [8, 128], strides = [1, 1]} : vector<8x384xf32> to vector<8x128xf32>
    %60 = arith.addf %58, %59 : vector<8x128xf32>
    %61 = arith.negf %60 : vector<8x128xf32>
    %62 = math.exp %61 : vector<8x128xf32>
    %cst_21 = arith.constant 1.000000e+00 : f32
    %63 = vector.broadcast %cst_21 : f32 to vector<8x128xf32>
    %64 = arith.addf %63, %62 : vector<8x128xf32>
    %65 = arith.divf %63, %64 : vector<8x128xf32>
    %66 = vector.extract_strided_slice %46 {offsets = [0, 256], sizes = [8, 128], strides = [1, 1]} : vector<8x384xf32> to vector<8x128xf32>
    %67 = vector.extract_strided_slice %49 {offsets = [0, 256], sizes = [8, 128], strides = [1, 1]} : vector<8x384xf32> to vector<8x128xf32>
    %68 = arith.mulf %57, %67 : vector<8x128xf32>
    %69 = arith.addf %66, %68 : vector<8x128xf32>
    %70 = math.tanh %69 : vector<8x128xf32>
    %cst_22 = arith.constant 1.000000e+00 : f32
    %71 = vector.broadcast %cst_22 : f32 to vector<8x128xf32>
    %72 = arith.subf %71, %65 : vector<8x128xf32>
    %73 = arith.mulf %72, %70 : vector<8x128xf32>
    %74 = arith.mulf %65, %42 : vector<8x128xf32>
    %75 = arith.addf %73, %74 : vector<8x128xf32>
    %c2_i32 = arith.constant 2 : i32
    %c8_i32_23 = arith.constant 8 : i32
    %76 = arith.muli %c2_i32, %c8_i32_23 : i32
    %77 = tpu.assume_multiple %76, 8 : i32
    %78 = arith.index_cast %77 : i32 to index
    %c0_24 = arith.constant 0 : index
    %79 = vector.load %arg7[%78, %c0_24] : memref<48x384xf32, #tpu.memory_space<vmem>>, vector<8x384xf32>
    %cst_25 = arith.constant dense<0.000000e+00> : vector<8x384xf32>
    %80 = tpu.matmul %75, %7, %cst_25 {dimension_numbers = #tpu.dot_dimension_numbers<[1], [0], [0], [1], [0, 0, 1, 1], [], []>} : vector<8x128xf32>, vector<128x384xf32>, vector<8x384xf32> -> vector<8x384xf32>
    %81 = vector.broadcast %8 : vector<1x384xf32> to vector<8x384xf32>
    %82 = arith.addf %80, %81 : vector<8x384xf32>
    %83 = vector.extract_strided_slice %79 {offsets = [0, 0], sizes = [8, 128], strides = [1, 1]} : vector<8x384xf32> to vector<8x128xf32>
    %84 = vector.extract_strided_slice %82 {offsets = [0, 0], sizes = [8, 128], strides = [1, 1]} : vector<8x384xf32> to vector<8x128xf32>
    %85 = arith.addf %83, %84 : vector<8x128xf32>
    %86 = arith.negf %85 : vector<8x128xf32>
    %87 = math.exp %86 : vector<8x128xf32>
    %cst_26 = arith.constant 1.000000e+00 : f32
    %88 = vector.broadcast %cst_26 : f32 to vector<8x128xf32>
    %89 = arith.addf %88, %87 : vector<8x128xf32>
    %90 = arith.divf %88, %89 : vector<8x128xf32>
    %91 = vector.extract_strided_slice %79 {offsets = [0, 128], sizes = [8, 128], strides = [1, 1]} : vector<8x384xf32> to vector<8x128xf32>
    %92 = vector.extract_strided_slice %82 {offsets = [0, 128], sizes = [8, 128], strides = [1, 1]} : vector<8x384xf32> to vector<8x128xf32>
    %93 = arith.addf %91, %92 : vector<8x128xf32>
    %94 = arith.negf %93 : vector<8x128xf32>
    %95 = math.exp %94 : vector<8x128xf32>
    %cst_27 = arith.constant 1.000000e+00 : f32
    %96 = vector.broadcast %cst_27 : f32 to vector<8x128xf32>
    %97 = arith.addf %96, %95 : vector<8x128xf32>
    %98 = arith.divf %96, %97 : vector<8x128xf32>
    %99 = vector.extract_strided_slice %79 {offsets = [0, 256], sizes = [8, 128], strides = [1, 1]} : vector<8x384xf32> to vector<8x128xf32>
    %100 = vector.extract_strided_slice %82 {offsets = [0, 256], sizes = [8, 128], strides = [1, 1]} : vector<8x384xf32> to vector<8x128xf32>
    %101 = arith.mulf %90, %100 : vector<8x128xf32>
    %102 = arith.addf %99, %101 : vector<8x128xf32>
    %103 = math.tanh %102 : vector<8x128xf32>
    %cst_28 = arith.constant 1.000000e+00 : f32
    %104 = vector.broadcast %cst_28 : f32 to vector<8x128xf32>
    %105 = arith.subf %104, %98 : vector<8x128xf32>
    %106 = arith.mulf %105, %103 : vector<8x128xf32>
    %107 = arith.mulf %98, %75 : vector<8x128xf32>
    %108 = arith.addf %106, %107 : vector<8x128xf32>
    %c3_i32 = arith.constant 3 : i32
    %c8_i32_29 = arith.constant 8 : i32
    %109 = arith.muli %c3_i32, %c8_i32_29 : i32
    %110 = tpu.assume_multiple %109, 8 : i32
    %111 = arith.index_cast %110 : i32 to index
    %c0_30 = arith.constant 0 : index
    %112 = vector.load %arg7[%111, %c0_30] : memref<48x384xf32, #tpu.memory_space<vmem>>, vector<8x384xf32>
    %cst_31 = arith.constant dense<0.000000e+00> : vector<8x384xf32>
    %113 = tpu.matmul %108, %7, %cst_31 {dimension_numbers = #tpu.dot_dimension_numbers<[1], [0], [0], [1], [0, 0, 1, 1], [], []>} : vector<8x128xf32>, vector<128x384xf32>, vector<8x384xf32> -> vector<8x384xf32>
    %114 = vector.broadcast %8 : vector<1x384xf32> to vector<8x384xf32>
    %115 = arith.addf %113, %114 : vector<8x384xf32>
    %116 = vector.extract_strided_slice %112 {offsets = [0, 0], sizes = [8, 128], strides = [1, 1]} : vector<8x384xf32> to vector<8x128xf32>
    %117 = vector.extract_strided_slice %115 {offsets = [0, 0], sizes = [8, 128], strides = [1, 1]} : vector<8x384xf32> to vector<8x128xf32>
    %118 = arith.addf %116, %117 : vector<8x128xf32>
    %119 = arith.negf %118 : vector<8x128xf32>
    %120 = math.exp %119 : vector<8x128xf32>
    %cst_32 = arith.constant 1.000000e+00 : f32
    %121 = vector.broadcast %cst_32 : f32 to vector<8x128xf32>
    %122 = arith.addf %121, %120 : vector<8x128xf32>
    %123 = arith.divf %121, %122 : vector<8x128xf32>
    %124 = vector.extract_strided_slice %112 {offsets = [0, 128], sizes = [8, 128], strides = [1, 1]} : vector<8x384xf32> to vector<8x128xf32>
    %125 = vector.extract_strided_slice %115 {offsets = [0, 128], sizes = [8, 128], strides = [1, 1]} : vector<8x384xf32> to vector<8x128xf32>
    %126 = arith.addf %124, %125 : vector<8x128xf32>
    %127 = arith.negf %126 : vector<8x128xf32>
    %128 = math.exp %127 : vector<8x128xf32>
    %cst_33 = arith.constant 1.000000e+00 : f32
    %129 = vector.broadcast %cst_33 : f32 to vector<8x128xf32>
    %130 = arith.addf %129, %128 : vector<8x128xf32>
    %131 = arith.divf %129, %130 : vector<8x128xf32>
    %132 = vector.extract_strided_slice %112 {offsets = [0, 256], sizes = [8, 128], strides = [1, 1]} : vector<8x384xf32> to vector<8x128xf32>
    %133 = vector.extract_strided_slice %115 {offsets = [0, 256], sizes = [8, 128], strides = [1, 1]} : vector<8x384xf32> to vector<8x128xf32>
    %134 = arith.mulf %123, %133 : vector<8x128xf32>
    %135 = arith.addf %132, %134 : vector<8x128xf32>
    %136 = math.tanh %135 : vector<8x128xf32>
    %cst_34 = arith.constant 1.000000e+00 : f32
    %137 = vector.broadcast %cst_34 : f32 to vector<8x128xf32>
    %138 = arith.subf %137, %131 : vector<8x128xf32>
    %139 = arith.mulf %138, %136 : vector<8x128xf32>
    %140 = arith.mulf %131, %108 : vector<8x128xf32>
    %141 = arith.addf %139, %140 : vector<8x128xf32>
    %c4_i32 = arith.constant 4 : i32
    %c8_i32_35 = arith.constant 8 : i32
    %142 = arith.muli %c4_i32, %c8_i32_35 : i32
    %143 = tpu.assume_multiple %142, 8 : i32
    %144 = arith.index_cast %143 : i32 to index
    %c0_36 = arith.constant 0 : index
    %145 = vector.load %arg7[%144, %c0_36] : memref<48x384xf32, #tpu.memory_space<vmem>>, vector<8x384xf32>
    %cst_37 = arith.constant dense<0.000000e+00> : vector<8x384xf32>
    %146 = tpu.matmul %141, %7, %cst_37 {dimension_numbers = #tpu.dot_dimension_numbers<[1], [0], [0], [1], [0, 0, 1, 1], [], []>} : vector<8x128xf32>, vector<128x384xf32>, vector<8x384xf32> -> vector<8x384xf32>
    %147 = vector.broadcast %8 : vector<1x384xf32> to vector<8x384xf32>
    %148 = arith.addf %146, %147 : vector<8x384xf32>
    %149 = vector.extract_strided_slice %145 {offsets = [0, 0], sizes = [8, 128], strides = [1, 1]} : vector<8x384xf32> to vector<8x128xf32>
    %150 = vector.extract_strided_slice %148 {offsets = [0, 0], sizes = [8, 128], strides = [1, 1]} : vector<8x384xf32> to vector<8x128xf32>
    %151 = arith.addf %149, %150 : vector<8x128xf32>
    %152 = arith.negf %151 : vector<8x128xf32>
    %153 = math.exp %152 : vector<8x128xf32>
    %cst_38 = arith.constant 1.000000e+00 : f32
    %154 = vector.broadcast %cst_38 : f32 to vector<8x128xf32>
    %155 = arith.addf %154, %153 : vector<8x128xf32>
    %156 = arith.divf %154, %155 : vector<8x128xf32>
    %157 = vector.extract_strided_slice %145 {offsets = [0, 128], sizes = [8, 128], strides = [1, 1]} : vector<8x384xf32> to vector<8x128xf32>
    %158 = vector.extract_strided_slice %148 {offsets = [0, 128], sizes = [8, 128], strides = [1, 1]} : vector<8x384xf32> to vector<8x128xf32>
    %159 = arith.addf %157, %158 : vector<8x128xf32>
    %160 = arith.negf %159 : vector<8x128xf32>
    %161 = math.exp %160 : vector<8x128xf32>
    %cst_39 = arith.constant 1.000000e+00 : f32
    %162 = vector.broadcast %cst_39 : f32 to vector<8x128xf32>
    %163 = arith.addf %162, %161 : vector<8x128xf32>
    %164 = arith.divf %162, %163 : vector<8x128xf32>
    %165 = vector.extract_strided_slice %145 {offsets = [0, 256], sizes = [8, 128], strides = [1, 1]} : vector<8x384xf32> to vector<8x128xf32>
    %166 = vector.extract_strided_slice %148 {offsets = [0, 256], sizes = [8, 128], strides = [1, 1]} : vector<8x384xf32> to vector<8x128xf32>
    %167 = arith.mulf %156, %166 : vector<8x128xf32>
    %168 = arith.addf %165, %167 : vector<8x128xf32>
    %169 = math.tanh %168 : vector<8x128xf32>
    %cst_40 = arith.constant 1.000000e+00 : f32
    %170 = vector.broadcast %cst_40 : f32 to vector<8x128xf32>
    %171 = arith.subf %170, %164 : vector<8x128xf32>
    %172 = arith.mulf %171, %169 : vector<8x128xf32>
    %173 = arith.mulf %164, %141 : vector<8x128xf32>
    %174 = arith.addf %172, %173 : vector<8x128xf32>
    %c5_i32 = arith.constant 5 : i32
    %c8_i32_41 = arith.constant 8 : i32
    %175 = arith.muli %c5_i32, %c8_i32_41 : i32
    %176 = tpu.assume_multiple %175, 8 : i32
    %177 = arith.index_cast %176 : i32 to index
    %c0_42 = arith.constant 0 : index
    %178 = vector.load %arg7[%177, %c0_42] : memref<48x384xf32, #tpu.memory_space<vmem>>, vector<8x384xf32>
    %cst_43 = arith.constant dense<0.000000e+00> : vector<8x384xf32>
    %179 = tpu.matmul %174, %7, %cst_43 {dimension_numbers = #tpu.dot_dimension_numbers<[1], [0], [0], [1], [0, 0, 1, 1], [], []>} : vector<8x128xf32>, vector<128x384xf32>, vector<8x384xf32> -> vector<8x384xf32>
    %180 = vector.broadcast %8 : vector<1x384xf32> to vector<8x384xf32>
    %181 = arith.addf %179, %180 : vector<8x384xf32>
    %182 = vector.extract_strided_slice %178 {offsets = [0, 0], sizes = [8, 128], strides = [1, 1]} : vector<8x384xf32> to vector<8x128xf32>
    %183 = vector.extract_strided_slice %181 {offsets = [0, 0], sizes = [8, 128], strides = [1, 1]} : vector<8x384xf32> to vector<8x128xf32>
    %184 = arith.addf %182, %183 : vector<8x128xf32>
    %185 = arith.negf %184 : vector<8x128xf32>
    %186 = math.exp %185 : vector<8x128xf32>
    %cst_44 = arith.constant 1.000000e+00 : f32
    %187 = vector.broadcast %cst_44 : f32 to vector<8x128xf32>
    %188 = arith.addf %187, %186 : vector<8x128xf32>
    %189 = arith.divf %187, %188 : vector<8x128xf32>
    %190 = vector.extract_strided_slice %178 {offsets = [0, 128], sizes = [8, 128], strides = [1, 1]} : vector<8x384xf32> to vector<8x128xf32>
    %191 = vector.extract_strided_slice %181 {offsets = [0, 128], sizes = [8, 128], strides = [1, 1]} : vector<8x384xf32> to vector<8x128xf32>
    %192 = arith.addf %190, %191 : vector<8x128xf32>
    %193 = arith.negf %192 : vector<8x128xf32>
    %194 = math.exp %193 : vector<8x128xf32>
    %cst_45 = arith.constant 1.000000e+00 : f32
    %195 = vector.broadcast %cst_45 : f32 to vector<8x128xf32>
    %196 = arith.addf %195, %194 : vector<8x128xf32>
    %197 = arith.divf %195, %196 : vector<8x128xf32>
    %198 = vector.extract_strided_slice %178 {offsets = [0, 256], sizes = [8, 128], strides = [1, 1]} : vector<8x384xf32> to vector<8x128xf32>
    %199 = vector.extract_strided_slice %181 {offsets = [0, 256], sizes = [8, 128], strides = [1, 1]} : vector<8x384xf32> to vector<8x128xf32>
    %200 = arith.mulf %189, %199 : vector<8x128xf32>
    %201 = arith.addf %198, %200 : vector<8x128xf32>
    %202 = math.tanh %201 : vector<8x128xf32>
    %cst_46 = arith.constant 1.000000e+00 : f32
    %203 = vector.broadcast %cst_46 : f32 to vector<8x128xf32>
    %204 = arith.subf %203, %197 : vector<8x128xf32>
    %205 = arith.mulf %204, %202 : vector<8x128xf32>
    %206 = arith.mulf %197, %174 : vector<8x128xf32>
    %207 = arith.addf %205, %206 : vector<8x128xf32>
    %c6_i32 = arith.constant 6 : i32
    %c0_47 = arith.constant 0 : index
    %c0_48 = arith.constant 0 : index
    %208 = vector.load %arg6[%c0_47, %c0_48] : memref<8x128xf32, #tpu.memory_space<vmem>>, vector<8x128xf32>
    tpu.vector_store %arg6[%c0_47, %c0_48], %207 {strides = array<i32>} : memref<8x128xf32, #tpu.memory_space<vmem>>, vector<8x128xf32>,
    return
  }
  func.func @transform_0(%arg0: i32) -> (i32, i32) {
    %c0_i32 = arith.constant 0 : i32
    %c0_i32_0 = arith.constant 0 : i32
    %c0_i32_1 = arith.constant 0 : i32
    return %c0_i32, %c0_i32_0 : i32, i32
  }
  func.func @transform_1(%arg0: i32) -> (i32, i32) {
    %c0_i32 = arith.constant 0 : i32
    %c0_i32_0 = arith.constant 0 : i32
    %c0_i32_1 = arith.constant 0 : i32
    return %c0_i32, %c0_i32_0 : i32, i32
  }
  func.func @transform_2(%arg0: i32) -> (i32, i32) {
    %c0_i32 = arith.constant 0 : i32
    %c0_i32_0 = arith.constant 0 : i32
    %c0_i32_1 = arith.constant 0 : i32
    return %c0_i32, %c0_i32_0 : i32, i32
  }
  func.func @transform_3(%arg0: i32) -> (i32, i32) {
    %c0_i32 = arith.constant 0 : i32
    %c0_i32_0 = arith.constant 0 : i32
    %c0_i32_1 = arith.constant 0 : i32
    return %c0_i32, %c0_i32_0 : i32, i32
  }
  func.func @transform_4(%arg0: i32) -> (i32, i32) {
    %c0_i32 = arith.constant 0 : i32
    %c0_i32_0 = arith.constant 0 : i32
    %c0_i32_1 = arith.constant 0 : i32
    return %c0_i32, %c0_i32_0 : i32, i32
  }
  func.func @transform_5(%arg0: i32) -> (i32, i32) {
    %c0_i32 = arith.constant 0 : i32
    %c0_i32_0 = arith.constant 0 : i32
    %c0_i32_1 = arith.constant 0 : i32
    return %c0_i32, %c0_i32_0 : i32, i32
  }
}

module attributes {stable_mosaic.version = 11 : i64} {
  func.func @_decoder_seq_kernel(%arg0: i32, %arg1: memref<6xi32, #tpu.memory_space<smem>>, %arg2: memref<8x128xf32, #tpu.memory_space<vmem>>, %arg3: memref<1x8x128xf32, #tpu.memory_space<vmem>>, %arg4: memref<128x128xf32, #tpu.memory_space<vmem>>, %arg5: memref<128x384xf32, #tpu.memory_space<vmem>>, %arg6: memref<128x384xf32, #tpu.memory_space<vmem>>, %arg7: memref<1x384xf32, #tpu.memory_space<vmem>>, %arg8: memref<1x384xf32, #tpu.memory_space<vmem>>, %arg9: memref<128x128xf32, #tpu.memory_space<vmem>>, %arg10: memref<1x128xf32, #tpu.memory_space<vmem>>, %arg11: memref<1x8x128xf32, #tpu.memory_space<vmem>>, %arg12: memref<8x128xf32, #tpu.memory_space<vmem>>, %arg13: memref<8x128xf32, #tpu.memory_space<vmem>>) attributes {dimension_semantics = [#tpu.dimension_semantics<arbitrary>], iteration_bounds = array<i64: 6>, scalar_prefetch = 1 : i64, scratch_operands = 2 : i64, tpu.core_type = #tpu.core_type<tc>, window_params = [{pipeline_mode = #tpu.pipeline_mode<synchronous>, transform_indices = @transform_0, window_bounds = array<i64: 8, 128>}, {transform_indices = @transform_1, window_bounds = array<i64: 1, 8, 128>}, {pipeline_mode = #tpu.pipeline_mode<synchronous>, transform_indices = @transform_2, window_bounds = array<i64: 128, 128>}, {pipeline_mode = #tpu.pipeline_mode<synchronous>, transform_indices = @transform_3, window_bounds = array<i64: 128, 384>}, {pipeline_mode = #tpu.pipeline_mode<synchronous>, transform_indices = @transform_4, window_bounds = array<i64: 128, 384>}, {pipeline_mode = #tpu.pipeline_mode<synchronous>, transform_indices = @transform_5, window_bounds = array<i64: 1, 384>}, {pipeline_mode = #tpu.pipeline_mode<synchronous>, transform_indices = @transform_6, window_bounds = array<i64: 1, 384>}, {pipeline_mode = #tpu.pipeline_mode<synchronous>, transform_indices = @transform_7, window_bounds = array<i64: 128, 128>}, {pipeline_mode = #tpu.pipeline_mode<synchronous>, transform_indices = @transform_8, window_bounds = array<i64: 1, 128>}, {transform_indices = @transform_9, window_bounds = array<i64: 1, 8, 128>}]} {
    %c0_i32 = arith.constant 0 : i32
    %0 = arith.cmpi eq, %arg0, %c0_i32 : i32
    %1 = arith.extui %0 : i1 to i32
    %c0_i32_0 = arith.constant 0 : i32
    %2 = arith.cmpi ne, %1, %c0_i32_0 : i32
    scf.if %2 {
      %c0_39 = arith.constant 0 : index
      %c0_40 = arith.constant 0 : index
      %81 = vector.load %arg2[%c0_39, %c0_40] : memref<8x128xf32, #tpu.memory_space<vmem>>, vector<8x128xf32>
      %c0_41 = arith.constant 0 : index
      %c0_42 = arith.constant 0 : index
      %82 = vector.load %arg12[%c0_41, %c0_42] : memref<8x128xf32, #tpu.memory_space<vmem>>, vector<8x128xf32>
      tpu.vector_store %arg12[%c0_41, %c0_42], %81 {strides = array<i32>} : memref<8x128xf32, #tpu.memory_space<vmem>>, vector<8x128xf32>,
      %cst_43 = arith.constant 0.000000e+00 : f32
      %83 = vector.broadcast %cst_43 : f32 to vector<8x128xf32>
      %c0_44 = arith.constant 0 : index
      %c0_45 = arith.constant 0 : index
      %84 = vector.load %arg13[%c0_44, %c0_45] : memref<8x128xf32, #tpu.memory_space<vmem>>, vector<8x128xf32>
      tpu.vector_store %arg13[%c0_44, %c0_45], %83 {strides = array<i32>} : memref<8x128xf32, #tpu.memory_space<vmem>>, vector<8x128xf32>,
    } else {
    }
    %c0_i32_1 = arith.constant 0 : i32
    %3 = arith.cmpi eq, %arg0, %c0_i32_1 : i32
    %4 = arith.index_cast %arg0 : i32 to index
    %5 = memref.load %arg1[%4] : memref<6xi32, #tpu.memory_space<smem>>
    %c0_i32_2 = arith.constant 0 : i32
    %6 = arith.cmpi ne, %5, %c0_i32_2 : i32
    %7 = arith.ori %3, %6 : i1
    %8 = arith.extui %7 : i1 to i32
    %9 = arith.sitofp %8 : i32 to f32
    %c0 = arith.constant 0 : index
    %c0_3 = arith.constant 0 : index
    %c0_4 = arith.constant 0 : index
    %10 = vector.load %arg3[%c0, %c0_3, %c0_4] : memref<1x8x128xf32, #tpu.memory_space<vmem>>, vector<1x8x128xf32>
    %11 = vector.shape_cast %10 : vector<1x8x128xf32> to vector<8x128xf32>
    %12 = vector.broadcast %9 : f32 to vector<8x128xf32>
    %13 = arith.mulf %12, %11 : vector<8x128xf32>
    %cst = arith.constant 1.000000e+00 : f32
    %14 = arith.subf %cst, %9 : f32
    %c0_5 = arith.constant 0 : index
    %c0_6 = arith.constant 0 : index
    %15 = vector.load %arg13[%c0_5, %c0_6] : memref<8x128xf32, #tpu.memory_space<vmem>>, vector<8x128xf32>
    %16 = vector.broadcast %14 : f32 to vector<8x128xf32>
    %17 = arith.mulf %16, %15 : vector<8x128xf32>
    %18 = arith.addf %13, %17 : vector<8x128xf32>
    %c0_7 = arith.constant 0 : index
    %c0_8 = arith.constant 0 : index
    %19 = vector.load %arg12[%c0_7, %c0_8] : memref<8x128xf32, #tpu.memory_space<vmem>>, vector<8x128xf32>
    %c0_9 = arith.constant 0 : index
    %c0_10 = arith.constant 0 : index
    %20 = vector.load %arg5[%c0_9, %c0_10] : memref<128x384xf32, #tpu.memory_space<vmem>>, vector<128x384xf32>
    %cst_11 = arith.constant dense<0.000000e+00> : vector<8x384xf32>
    %21 = tpu.matmul %18, %20, %cst_11 {dimension_numbers = #tpu.dot_dimension_numbers<[1], [0], [0], [1], [0, 0, 1, 1], [], []>} : vector<8x128xf32>, vector<128x384xf32>, vector<8x384xf32> -> vector<8x384xf32>
    %c0_12 = arith.constant 0 : index
    %c0_13 = arith.constant 0 : index
    %22 = vector.load %arg7[%c0_12, %c0_13] : memref<1x384xf32, #tpu.memory_space<vmem>>, vector<1x384xf32>
    %23 = vector.broadcast %22 : vector<1x384xf32> to vector<8x384xf32>
    %24 = arith.addf %21, %23 : vector<8x384xf32>
    %c0_14 = arith.constant 0 : index
    %c0_15 = arith.constant 0 : index
    %25 = vector.load %arg6[%c0_14, %c0_15] : memref<128x384xf32, #tpu.memory_space<vmem>>, vector<128x384xf32>
    %cst_16 = arith.constant dense<0.000000e+00> : vector<8x384xf32>
    %26 = tpu.matmul %19, %25, %cst_16 {dimension_numbers = #tpu.dot_dimension_numbers<[1], [0], [0], [1], [0, 0, 1, 1], [], []>} : vector<8x128xf32>, vector<128x384xf32>, vector<8x384xf32> -> vector<8x384xf32>
    %c0_17 = arith.constant 0 : index
    %c0_18 = arith.constant 0 : index
    %27 = vector.load %arg8[%c0_17, %c0_18] : memref<1x384xf32, #tpu.memory_space<vmem>>, vector<1x384xf32>
    %28 = vector.broadcast %27 : vector<1x384xf32> to vector<8x384xf32>
    %29 = arith.addf %26, %28 : vector<8x384xf32>
    %30 = vector.extract_strided_slice %24 {offsets = [0, 0], sizes = [8, 128], strides = [1, 1]} : vector<8x384xf32> to vector<8x128xf32>
    %31 = vector.extract_strided_slice %29 {offsets = [0, 0], sizes = [8, 128], strides = [1, 1]} : vector<8x384xf32> to vector<8x128xf32>
    %32 = arith.addf %30, %31 : vector<8x128xf32>
    %33 = arith.negf %32 : vector<8x128xf32>
    %34 = math.exp %33 : vector<8x128xf32>
    %cst_19 = arith.constant 1.000000e+00 : f32
    %35 = vector.broadcast %cst_19 : f32 to vector<8x128xf32>
    %36 = arith.addf %35, %34 : vector<8x128xf32>
    %37 = arith.divf %35, %36 : vector<8x128xf32>
    %38 = vector.extract_strided_slice %24 {offsets = [0, 128], sizes = [8, 128], strides = [1, 1]} : vector<8x384xf32> to vector<8x128xf32>
    %39 = vector.extract_strided_slice %29 {offsets = [0, 128], sizes = [8, 128], strides = [1, 1]} : vector<8x384xf32> to vector<8x128xf32>
    %40 = arith.addf %38, %39 : vector<8x128xf32>
    %41 = arith.negf %40 : vector<8x128xf32>
    %42 = math.exp %41 : vector<8x128xf32>
    %cst_20 = arith.constant 1.000000e+00 : f32
    %43 = vector.broadcast %cst_20 : f32 to vector<8x128xf32>
    %44 = arith.addf %43, %42 : vector<8x128xf32>
    %45 = arith.divf %43, %44 : vector<8x128xf32>
    %46 = vector.extract_strided_slice %24 {offsets = [0, 256], sizes = [8, 128], strides = [1, 1]} : vector<8x384xf32> to vector<8x128xf32>
    %47 = vector.extract_strided_slice %29 {offsets = [0, 256], sizes = [8, 128], strides = [1, 1]} : vector<8x384xf32> to vector<8x128xf32>
    %48 = arith.mulf %37, %47 : vector<8x128xf32>
    %49 = arith.addf %46, %48 : vector<8x128xf32>
    %50 = math.tanh %49 : vector<8x128xf32>
    %cst_21 = arith.constant 1.000000e+00 : f32
    %51 = vector.broadcast %cst_21 : f32 to vector<8x128xf32>
    %52 = arith.subf %51, %45 : vector<8x128xf32>
    %53 = arith.mulf %52, %50 : vector<8x128xf32>
    %54 = arith.mulf %45, %19 : vector<8x128xf32>
    %55 = arith.addf %53, %54 : vector<8x128xf32>
    %c0_22 = arith.constant 0 : index
    %c0_23 = arith.constant 0 : index
    %56 = vector.load %arg12[%c0_22, %c0_23] : memref<8x128xf32, #tpu.memory_space<vmem>>, vector<8x128xf32>
    tpu.vector_store %arg12[%c0_22, %c0_23], %55 {strides = array<i32>} : memref<8x128xf32, #tpu.memory_space<vmem>>, vector<8x128xf32>,
    %c0_24 = arith.constant 0 : index
    %c0_25 = arith.constant 0 : index
    %57 = vector.load %arg9[%c0_24, %c0_25] : memref<128x128xf32, #tpu.memory_space<vmem>>, vector<128x128xf32>
    %cst_26 = arith.constant dense<0.000000e+00> : vector<8x128xf32>
    %58 = tpu.matmul %55, %57, %cst_26 {dimension_numbers = #tpu.dot_dimension_numbers<[1], [0], [0], [1], [0, 0, 1, 1], [], []>} : vector<8x128xf32>, vector<128x128xf32>, vector<8x128xf32> -> vector<8x128xf32>
    %c0_27 = arith.constant 0 : index
    %c0_28 = arith.constant 0 : index
    %59 = vector.load %arg10[%c0_27, %c0_28] : memref<1x128xf32, #tpu.memory_space<vmem>>, vector<1x128xf32>
    %60 = vector.broadcast %59 : vector<1x128xf32> to vector<8x128xf32>
    %61 = arith.addf %58, %60 : vector<8x128xf32>
    %c0_29 = arith.constant 0 : index
    %c0_30 = arith.constant 0 : index
    %c0_31 = arith.constant 0 : index
    %62 = vector.load %arg11[%c0_29, %c0_30, %c0_31] : memref<1x8x128xf32, #tpu.memory_space<vmem>>, vector<1x8x128xf32>
    %63 = vector.shape_cast %62 : vector<1x8x128xf32> to vector<8x128xf32>
    %64 = vector.shape_cast %61 : vector<8x128xf32> to vector<1x8x128xf32>
    tpu.vector_store %arg11[%c0_29, %c0_30, %c0_31], %64 {strides = array<i32>} : memref<1x8x128xf32, #tpu.memory_space<vmem>>, vector<1x8x128xf32>,
    %65 = tpu.iota {dimensions = array<i32: 1>} : vector<8x128xi32>
    %cst_32 = arith.constant dense<0xFF800000> : vector<8xf32>
    %66 = vector.multi_reduction <maximumf>, %61, %cst_32 [1] : vector<8x128xf32> to vector<8xf32>
    %67 = vector.shape_cast %66 : vector<8xf32> to vector<8x1xf32>
    %68 = vector.broadcast %67 : vector<8x1xf32> to vector<8x128xf32>
    %69 = arith.cmpf oeq, %61, %68 : vector<8x128xf32>
    %c128_i32 = arith.constant 128 : i32
    %70 = vector.broadcast %c128_i32 : i32 to vector<8x128xi32>
    %71 = arith.select %69, %65, %70 : vector<8x128xi1>, vector<8x128xi32>
    %cst_33 = arith.constant dense<2147483647> : vector<8xi32>
    %72 = vector.multi_reduction <minsi>, %71, %cst_33 [1] : vector<8x128xi32> to vector<8xi32>
    %73 = vector.shape_cast %72 : vector<8xi32> to vector<8x1xi32>
    %74 = vector.broadcast %73 : vector<8x1xi32> to vector<8x128xi32>
    %75 = arith.cmpi eq, %65, %74 : vector<8x128xi32>
    %76 = arith.extui %75 : vector<8x128xi1> to vector<8x128xi32>
    %77 = arith.sitofp %76 : vector<8x128xi32> to vector<8x128xf32>
    %c0_34 = arith.constant 0 : index
    %c0_35 = arith.constant 0 : index
    %78 = vector.load %arg4[%c0_34, %c0_35] : memref<128x128xf32, #tpu.memory_space<vmem>>, vector<128x128xf32>
    %cst_36 = arith.constant dense<0.000000e+00> : vector<8x128xf32>
    %79 = tpu.matmul %77, %78, %cst_36 {dimension_numbers = #tpu.dot_dimension_numbers<[1], [0], [0], [1], [0, 0, 1, 1], [], []>} : vector<8x128xf32>, vector<128x128xf32>, vector<8x128xf32> -> vector<8x128xf32>
    %c0_37 = arith.constant 0 : index
    %c0_38 = arith.constant 0 : index
    %80 = vector.load %arg13[%c0_37, %c0_38] : memref<8x128xf32, #tpu.memory_space<vmem>>, vector<8x128xf32>
    tpu.vector_store %arg13[%c0_37, %c0_38], %79 {strides = array<i32>} : memref<8x128xf32, #tpu.memory_space<vmem>>, vector<8x128xf32>,
    return
  }
  func.func @transform_0(%arg0: i32, %arg1: memref<6xi32, #tpu.memory_space<smem>>) -> (i32, i32) {
    %c0_i32 = arith.constant 0 : i32
    %c0_i32_0 = arith.constant 0 : i32
    %c0_i32_1 = arith.constant 0 : i32
    return %c0_i32, %c0_i32_0 : i32, i32
  }
  func.func @transform_1(%arg0: i32, %arg1: memref<6xi32, #tpu.memory_space<smem>>) -> (i32, i32, i32) {
    %c0_i32 = arith.constant 0 : i32
    %c0_i32_0 = arith.constant 0 : i32
    %c0_i32_1 = arith.constant 0 : i32
    return %arg0, %c0_i32, %c0_i32_0 : i32, i32, i32
  }
  func.func @transform_2(%arg0: i32, %arg1: memref<6xi32, #tpu.memory_space<smem>>) -> (i32, i32) {
    %c0_i32 = arith.constant 0 : i32
    %c0_i32_0 = arith.constant 0 : i32
    %c0_i32_1 = arith.constant 0 : i32
    return %c0_i32, %c0_i32_0 : i32, i32
  }
  func.func @transform_3(%arg0: i32, %arg1: memref<6xi32, #tpu.memory_space<smem>>) -> (i32, i32) {
    %c0_i32 = arith.constant 0 : i32
    %c0_i32_0 = arith.constant 0 : i32
    %c0_i32_1 = arith.constant 0 : i32
    return %c0_i32, %c0_i32_0 : i32, i32
  }
  func.func @transform_4(%arg0: i32, %arg1: memref<6xi32, #tpu.memory_space<smem>>) -> (i32, i32) {
    %c0_i32 = arith.constant 0 : i32
    %c0_i32_0 = arith.constant 0 : i32
    %c0_i32_1 = arith.constant 0 : i32
    return %c0_i32, %c0_i32_0 : i32, i32
  }
  func.func @transform_5(%arg0: i32, %arg1: memref<6xi32, #tpu.memory_space<smem>>) -> (i32, i32) {
    %c0_i32 = arith.constant 0 : i32
    %c0_i32_0 = arith.constant 0 : i32
    %c0_i32_1 = arith.constant 0 : i32
    return %c0_i32, %c0_i32_0 : i32, i32
  }
  func.func @transform_6(%arg0: i32, %arg1: memref<6xi32, #tpu.memory_space<smem>>) -> (i32, i32) {
    %c0_i32 = arith.constant 0 : i32
    %c0_i32_0 = arith.constant 0 : i32
    %c0_i32_1 = arith.constant 0 : i32
    return %c0_i32, %c0_i32_0 : i32, i32
  }
  func.func @transform_7(%arg0: i32, %arg1: memref<6xi32, #tpu.memory_space<smem>>) -> (i32, i32) {
    %c0_i32 = arith.constant 0 : i32
    %c0_i32_0 = arith.constant 0 : i32
    %c0_i32_1 = arith.constant 0 : i32
    return %c0_i32, %c0_i32_0 : i32, i32
  }
  func.func @transform_8(%arg0: i32, %arg1: memref<6xi32, #tpu.memory_space<smem>>) -> (i32, i32) {
    %c0_i32 = arith.constant 0 : i32
    %c0_i32_0 = arith.constant 0 : i32
    %c0_i32_1 = arith.constant 0 : i32
    return %c0_i32, %c0_i32_0 : i32, i32
  }
  func.func @transform_9(%arg0: i32, %arg1: memref<6xi32, #tpu.memory_space<smem>>) -> (i32, i32, i32) {
    %c0_i32 = arith.constant 0 : i32
    %c0_i32_0 = arith.constant 0 : i32
    %c0_i32_1 = arith.constant 0 : i32
    return %arg0, %c0_i32, %c0_i32_0 : i32, i32, i32
  }
}

</mosaic_0001>

<bundles_post_ra>
// kernel: seq2seq_forward.2
= control target key start
LH: loop header
LB: loop body
LE: loop exit
PB: predicated region body
PF: predicated region fallthrough
CT: control target
= control target key end

     0   :  { %v2274_v3 = vmov 0.0   ;;  %vm2276_vm0 = vmmov 0   ;;  %s2931_s1 = inlined_call_operand.vmem [shape: f32[128,384], index: 1, kind: input, shape index: {}]   ;;  %s2932_s0 = inlined_call_operand.vmem [shape: f32[48,128], index: 0, kind: input, shape index: {}]   ;;  %s2933_s2 = inlined_call_operand.vmem [shape: f32[128,384], index: 2, kind: input, shape index: {}]   ;;  %s2934_s3 = inlined_call_operand.vmem [shape: f32[1,384], index: 3, kind: input, shape index: {}]   ;;  %s2935_s4 = inlined_call_operand.vmem [shape: f32[1,384], index: 4, kind: input, shape index: {}]   ;;  %s2936_s5 = inlined_call_operand.vmem [shape: f32[8,128], index: 5, kind: output, shape index: {}]  }
   0x1   :  { %v27_v0 = vld [vmem:[%s2931_s1 + $0x8] sm:$0xff]  ;;  %v30_v1 = vld [vmem:[%s2931_s1 + $0x20] sm:$0xff]  ;;  %155 = vmatprep.mubr.f32.mxu0 %v2274_v3  ;;  %v29_v5 = vld [vmem:[%s2931_s1 + $0x18] sm:$0xff] }
   0x2   :  { %v26_v2 = vld [vmem:[%s2931_s1] sm:$0xff]  ;;  %v1775_v4 = vpack.c.bf16 %v30_v1, %v27_v0  ;;  %v33_v6 = vld [vmem:[%s2931_s1 + $0x38] sm:$0xff]  ;;  %v36_v7 = vld [vmem:[%s2931_s1 + $0x50] sm:$0xff] }
   0x3   :  { %v1777_v8 = vpack.c.bf16 %v29_v5, %v26_v2  ;;  %v1779_v9 = vpack.c.bf16 %v36_v7, %v33_v6  ;;  %v32_v10 = vld [vmem:[%s2931_s1 + $0x30] sm:$0xff]  ;;  %v35_v11 = vld [vmem:[%s2931_s1 + $0x48] sm:$0xff]  ;;  %v42_v13 = vld [vmem:[%s2931_s1 + $0x80] sm:$0xff] }
   0x4   :  { %v39_v12 = vld [vmem:[%s2931_s1 + $0x68] sm:$0xff]  ;;  %1776 = vmatprep.subr.bf16.mxu0 %v1775_v4  ;;  %v1781_v14 = vpack.c.bf16 %v35_v11, %v32_v10  ;;  %v38_v16 = vld [vmem:[%s2931_s1 + $0x60] sm:$0xff]  ;;  %v41_v17 = vld [vmem:[%s2931_s1 + $0x78] sm:$0xff] }
   0x5   :  { %1778 = vmatpush1.bf16.msra.mxu0 %v1777_v8  ;;  %v1783_v15 = vpack.c.bf16 %v42_v13, %v39_v12  ;;  %v45_v18 = vld [vmem:[%s2931_s1 + $0x98] sm:$0xff]  ;;  %v48_v19 = vld [vmem:[%s2931_s1 + $0xb0] sm:$0xff]  ;;  %v1785_v20 = vpack.c.bf16 %v41_v17, %v38_v16  ;;  %v47_v23 = vld [vmem:[%s2931_s1 + $0xa8] sm:$0xff] }
   0x6   :  { %1780 = vmatprep.subr.bf16.mxu0 %v1779_v9  ;;  %v44_v21 = vld [vmem:[%s2931_s1 + $0x90] sm:$0xff]  ;;  %v1787_v22 = vpack.c.bf16 %v48_v19, %v45_v18  ;;  %v31_v25 = vld [vmem:[%s2931_s1 + $0x28] sm:$0xff]  ;;  %v54_v27 = vld [vmem:[%s2931_s1 + $0xe0] sm:$0xff] }
   0x7   :  { %v28_v24 = vld [vmem:[%s2931_s1 + $0x10] sm:$0xff]  ;;  %v51_v26 = vld [vmem:[%s2931_s1 + $0xc8] sm:$0xff]  ;;  %v34_v29 = vld [vmem:[%s2931_s1 + $0x40] sm:$0xff]  ;;  %v1789_v31 = vpack.c.bf16 %v47_v23, %v44_v21 }
   0x8   :  { %v1807_v28 = vpack.c.bf16 %v31_v25, %v28_v24  ;;  %v37_v30 = vld [vmem:[%s2931_s1 + $0x58] sm:$0xff]  ;;  %v50_v32 = vld [vmem:[%s2931_s1 + $0xc0] sm:$0xff]  ;;  %v1791_v35 = vpack.c.bf16 %v54_v27, %v51_v26  ;;  %v40_v37 = vld [vmem:[%s2931_s1 + $0x70] sm:$0xff] }
   0x9   :  { %1782 = vmatpush1.bf16.msra.mxu0 %v1781_v14  ;;  %v53_v33 = vld [vmem:[%s2931_s1 + $0xd8] sm:$0xff]  ;;  %v1811_v34 = vpack.c.bf16 %v37_v30, %v34_v29  ;;  %v2383_v36 = vld [vmem:[%s2932_s0] sm:$0xff]  ;;  %v43_v38 = vld [vmem:[%s2931_s1 + $0x88] sm:$0xff] }
   0xa   :  { %1784 = vmatprep.subr.bf16.mxu0 %v1783_v15  ;;  %1808 = vmatprep.subr.bf16.mxu1 %v1807_v28  ;;  %v57_v39 = vld [vmem:[%s2931_s1 + $0xf8] sm:$0xff]  ;;  %v60_v40 = vld [vmem:[%s2931_s1 + $0x110] sm:$0xff]  ;;  %v1815_v41 = vpack.c.bf16 %v43_v38, %v40_v37  ;;  %v46_v42 = vld [vmem:[%s2931_s1 + $0xa0] sm:$0xff]  ;;  %v1793_v44 = vpack.c.bf16 %v53_v33, %v50_v32 }
   0xb   :  { %1810 = vmatpush3.bf16.msra.mxu1 %v1807_v28  ;;  %1556 = vmatprep.mubr.f32.mxu1 %v2383_v36  ;;  %v49_v43 = vld [vmem:[%s2931_s1 + $0xb8] sm:$0xff]  ;;  %v1795_v45 = vpack.c.bf16 %v60_v40, %v57_v39  ;;  %v56_v46 = vld [vmem:[%s2931_s1 + $0xf0] sm:$0xff]  ;;  %v59_v47 = vld [vmem:[%s2931_s1 + $0x108] sm:$0xff]  ;;  %v2275_v40 = vmov 0.0|0.0  }
   0xc   :  { %1812 = vmatprep.subr.bf16.mxu1 %v1811_v34  ;;  %v63_v48 = vld [vmem:[%s2931_s1 + $0x128] sm:$0xff]  ;;  %v66_v49 = vld [vmem:[%s2931_s1 + $0x140] sm:$0xff]  ;;  %v1819_v50 = vpack.c.bf16 %v49_v43, %v46_v42  ;;  %v52_v51 = vld [vmem:[%s2931_s1 + $0xd0] sm:$0xff]  ;;  %v1797_v53 = vpack.c.bf16 %v59_v47, %v56_v46 }
   0xd   :  { %1786 = vmatpush1.bf16.msra.mxu0 %v1785_v20  ;;  %v55_v52 = vld [vmem:[%s2931_s1 + $0xe8] sm:$0xff]  ;;  %v1799_v54 = vpack.c.bf16 %v66_v49, %v63_v48  ;;  %v62_v55 = vld [vmem:[%s2931_s1 + $0x120] sm:$0xff]  ;;  %v65_v56 = vld [vmem:[%s2931_s1 + $0x138] sm:$0xff] }
   0xe   :  { %1788 = vmatprep.subr.bf16.mxu0 %v1787_v22  ;;  %v69_v57 = vld [vmem:[%s2931_s1 + $0x158] sm:$0xff]  ;;  %v72_v58 = vld [vmem:[%s2931_s1 + $0x170] sm:$0xff]  ;;  %v1823_v59 = vpack.c.bf16 %v55_v52, %v52_v51  ;;  %v58_v60 = vld [vmem:[%s2931_s1 + $0x100] sm:$0xff]  ;;  %v1801_v62 = vpack.c.bf16 %v65_v56, %v62_v55 }
   0xf   :  { %1814 = vmatpush3.bf16.msra.mxu1 %v1811_v34  ;;  %v61_v61 = vld [vmem:[%s2931_s1 + $0x118] sm:$0xff]  ;;  %v1803_v63 = vpack.c.bf16 %v72_v58, %v69_v57  ;;  %v68_v0 = vld [vmem:[%s2931_s1 + $0x150] sm:$0xff]  ;;  %v71_v1 = vld [vmem:[%s2931_s1 + $0x168] sm:$0xff] }
  0x10   :  { %1816 = vmatprep.subr.bf16.mxu1 %v1815_v41  ;;  %v306_v2 = vld [vmem:[%s2933_s2 + $0x8] sm:$0xff]  ;;  %v309_v4 = vld [vmem:[%s2933_s2 + $0x20] sm:$0xff]  ;;  %v1827_v5 = vpack.c.bf16 %v61_v61, %v58_v60  ;;  %v64_v6 = vld [vmem:[%s2931_s1 + $0x130] sm:$0xff]  ;;  %v1805_v8 = vpack.c.bf16 %v71_v1, %v68_v0 }
  0x11   :  { %1790 = vmatpush1.bf16.msra.mxu0 %v1789_v31  ;;  %v67_v7 = vld [vmem:[%s2931_s1 + $0x148] sm:$0xff]  ;;  %v2458_v9 = vpack.c.bf16 %v309_v4, %v306_v2  ;;  %v305_v10 = vld [vmem:[%s2933_s2] sm:$0xff]  ;;  %v308_v11 = vld [vmem:[%s2933_s2 + $0x18] sm:$0xff] }
  0x12   :  { %1792 = vmatprep.subr.bf16.mxu0 %v1791_v35  ;;  %v312_v12 = vld [vmem:[%s2933_s2 + $0x38] sm:$0xff]  ;;  %v315_v13 = vld [vmem:[%s2933_s2 + $0x50] sm:$0xff]  ;;  %v1831_v14 = vpack.c.bf16 %v67_v7, %v64_v6  ;;  %v70_v15 = vld [vmem:[%s2931_s1 + $0x160] sm:$0xff]  ;;  %v2478_v17 = vpack.c.bf16 %v308_v11, %v305_v10 }
  0x13   :  { %1818 = vmatpush3.bf16.msra.mxu1 %v1815_v41  ;;  %v73_v16 = vld [vmem:[%s2931_s1 + $0x178] sm:$0xff]  ;;  %v2481_v18 = vpack.c.bf16 %v315_v13, %v312_v12  ;;  %v311_v19 = vld [vmem:[%s2933_s2 + $0x30] sm:$0xff]  ;;  %v314_v20 = vld [vmem:[%s2933_s2 + $0x48] sm:$0xff] }
  0x14   :  { %1820 = vmatprep.subr.bf16.mxu1 %v1819_v50  ;;  %v318_v21 = vld [vmem:[%s2933_s2 + $0x68] sm:$0xff]  ;;  %v321_v22 = vld [vmem:[%s2933_s2 + $0x80] sm:$0xff]  ;;  %v1835_v23 = vpack.c.bf16 %v73_v16, %v70_v15  ;;  %v2497_v24 = vpack.c.bf16 %v314_v20, %v311_v19  ;;  %v320_v28 = vld [vmem:[%s2933_s2 + $0x78] sm:$0xff] }
  0x15   :  { %1794 = vmatpush1.bf16.msra.mxu0 %v1793_v44  ;;  %v21_v25 = vld [vmem:[%s2932_s0 + $0x8] sm:$0xff]  ;;  %v2504_v26 = vpack.c.bf16 %v321_v22, %v318_v21  ;;  %v317_v27 = vld [vmem:[%s2933_s2 + $0x60] sm:$0xff]  ;;  %v324_v29 = vld [vmem:[%s2933_s2 + $0x98] sm:$0xff] }
  0x16   :  { %1796 = vmatprep.subr.bf16.mxu0 %v1795_v45  ;;  %v327_v30 = vld [vmem:[%s2933_s2 + $0xb0] sm:$0xff]  ;;  %v310_v32 = vld [vmem:[%s2933_s2 + $0x28] sm:$0xff]  ;;  %v2525_v33 = vpack.c.bf16 %v320_v28, %v317_v27  ;;  %v333_v39 = vld [vmem:[%s2933_s2 + $0xe0] sm:$0xff] }
  0x17   :  { %1822 = vmatpush3.bf16.msra.mxu1 %v1819_v50  ;;  %v307_v31 = vld [vmem:[%s2933_s2 + $0x10] sm:$0xff]  ;;  %v2532_v35 = vpack.c.bf16 %v327_v30, %v324_v29  ;;  %v326_v37 = vld [vmem:[%s2933_s2 + $0xa8] sm:$0xff]  ;;  %v313_v42 = vld [vmem:[%s2933_s2 + $0x40] sm:$0xff] }
  0x18   :  { %1824 = vmatprep.subr.bf16.mxu1 %v1823_v59  ;;  %v22_v34 = vld [vmem:[%s2932_s0 + $0x10] sm:$0xff]  ;;  %v330_v38 = vld [vmem:[%s2933_s2 + $0xc8] sm:$0xff]  ;;  %v2547_v41 = vpack.c.bf16 %v310_v32, %v307_v31  ;;  %v316_v43 = vld [vmem:[%s2933_s2 + $0x58] sm:$0xff]  ;;  %v76_v31 = vlaneseq }
  0x19   :  { %1798 = vmatpush1.bf16.msra.mxu0 %v1797_v53  ;;  %v23_v45 = vld [vmem:[%s2932_s0 + $0x18] sm:$0xff]  ;;  %v2563_v46 = vpack.c.bf16 %v333_v39, %v330_v38  ;;  %v329_v47 = vld [vmem:[%s2933_s2 + $0xc0] sm:$0xff]  ;;  %v339_v50 = vld [vmem:[%s2933_s2 + $0x110] sm:$0xff]  ;;  %v2578_v51 = vpack.c.bf16 %v316_v43, %v313_v42 }
  0x1a   :  { %1800 = vmatprep.subr.bf16.mxu0 %v1799_v54  ;;  %v332_v48 = vld [vmem:[%s2933_s2 + $0xd8] sm:$0xff]  ;;  %v319_v52 = vld [vmem:[%s2933_s2 + $0x70] sm:$0xff]  ;;  %v322_v53 = vld [vmem:[%s2933_s2 + $0x88] sm:$0xff]  ;;  %v77_v32 = vshrl.u32 %v76_v31, 7 }
  0x1b   :  { %1826 = vmatpush3.bf16.msra.mxu1 %v1823_v59  ;;  %v336_v49 = vld [vmem:[%s2933_s2 + $0xf8] sm:$0xff]  ;;  %v2588_v54 = vpack.c.bf16 %v332_v48, %v329_v47  ;;  %v24_v55 = vld [vmem:[%s2932_s0 + $0x20] sm:$0xff]  ;;  %v335_v57 = vld [vmem:[%s2933_s2 + $0xf0] sm:$0xff]  ;;  %v2610_v61 = vpack.c.bf16 %v322_v53, %v319_v52 }
  0x1c   :  { %1828 = vmatprep.subr.bf16.mxu1 %v1827_v5  ;;  %v2595_v56 = vpack.c.bf16 %v339_v50, %v336_v49  ;;  %v338_v58 = vld [vmem:[%s2933_s2 + $0x108] sm:$0xff]  ;;  %v345_v60 = vld [vmem:[%s2933_s2 + $0x140] sm:$0xff]  ;;  %v348_v6 = vld [vmem:[%s2933_s2 + $0x158] sm:$0xff] }
  0x1d   :  { %1802 = vmatpush1.bf16.msra.mxu0 %v1801_v62  ;;  %v342_v59 = vld [vmem:[%s2933_s2 + $0x128] sm:$0xff]  ;;  %v325_v62 = vld [vmem:[%s2933_s2 + $0xa0] sm:$0xff]  ;;  %v2620_v0 = vpack.c.bf16 %v338_v58, %v335_v57  ;;  %v351_v7 = vld [vmem:[%s2933_s2 + $0x170] sm:$0xff]  ;;  %v82_v58 = vsub.s32 1, %v77_v32 }
  0x1e   :  { %1804 = vmatprep.subr.bf16.mxu0 %v1803_v63  ;;  %v328_v63 = vld [vmem:[%s2933_s2 + $0xb8] sm:$0xff]  ;;  %v25_v1 = vld [vmem:[%s2932_s0 + $0x28] sm:$0xff]  ;;  %v2627_v2 = vpack.c.bf16 %v345_v60, %v342_v59  ;;  %v341_v4 = vld [vmem:[%s2933_s2 + $0x120] sm:$0xff]  ;;  %v2658_v13 = vpack.c.bf16 %v351_v7, %v348_v6 }
  0x1f   :  { %1830 = vmatpush3.bf16.msra.mxu1 %v1827_v5  ;;  %v344_v5 = vld [vmem:[%s2933_s2 + $0x138] sm:$0xff]  ;;  %v331_v10 = vld [vmem:[%s2933_s2 + $0xd0] sm:$0xff]  ;;  %v334_v11 = vld [vmem:[%s2933_s2 + $0xe8] sm:$0xff] }
  0x20   :  { %1832 = vmatprep.subr.bf16.mxu1 %v1831_v14  ;;  %v2654_v12 = vpack.c.bf16 %v344_v5, %v341_v4  ;;  %v350_v15 = vld [vmem:[%s2933_s2 + $0x168] sm:$0xff]  ;;  %v2667_v16 = vpack.c.bf16 %v334_v11, %v331_v10  ;;  %v337_v19 = vld [vmem:[%s2933_s2 + $0x100] sm:$0xff]  ;;  %v340_v20 = vld [vmem:[%s2933_s2 + $0x118] sm:$0xff] }
  0x21   :  { %1806 = vmatpush1.bf16.msra.mxu0 %v1805_v8  ;;  %v2642_v8 = vpack.c.bf16 %v328_v63, %v325_v62  ;;  %v2681_v22 = vpack.c.bf16 %v340_v20, %v337_v19  ;;  %v349_v28 = vld [vmem:[%s2933_s2 + $0x160] sm:$0xff]  ;;  %v352_v29 = vld [vmem:[%s2933_s2 + $0x178] sm:$0xff] }
  0x22   :  { %1840 = vmatprep.subr.bf16.mxu0 %v2458_v9  ;;  %v2707_v30 = vpack.c.bf16 %v352_v29, %v349_v28  ;;  %v353_v57 = vld [vmem:[%s2935_s4] sm:$0x7] }
  0x23   :  { %1834 = vmatpush3.bf16.msra.mxu1 %v1831_v14  ;;  %v347_v14 = vld [vmem:[%s2933_s2 + $0x150] sm:$0xff]  ;;  %v368_v63 = vrot.slane %v353_v57, %v82_v58 }
  0x24   :  { %156 = vmatmul.mubr.f32.vlgmr.msra.gmra.mrb[0].mxu0 %v2383_v36  ;;  %1836 = vmatprep.subr.bf16.mxu1 %v1835_v23  ;;  %v323_v36 = vld [vmem:[%s2933_s2 + $0x90] sm:$0xff]  ;;  %v2677_v21 = vpack.c.bf16 %v350_v15, %v347_v14 }
  0x25   :  { %1842 = vmatpush1.bf16.msra.mxu0 %v2478_v17  ;;  %161 = vmatprep.mubr.f32.mxu0 %v2274_v3  ;;  %v2556_v44 = vpack.c.bf16 %v326_v37, %v323_v36  ;;  %v74_v36 = vld [vmem:[%s2934_s3] sm:$0x7] }
  0x26   :  { %1844 = vmatprep.subr.bf16.mxu0 %v2481_v18  ;;  %v83_v62 = vrot.slane %v74_v36, %v82_v58 }
  0x27   :  { %1838 = vmatpush3.bf16.msra.mxu1 %v1835_v23  ;;  %v343_v23 = vld [vmem:[%s2933_s2 + $0x130] sm:$0xff] }
  0x28   :  { %162 = vmatmul.mubr.f32.gmra.mrb[2].mxu0 %v21_v25  ;;  %1871 = vmatprep.subr.bf16.mxu1 %v2275_v40  ;;  %v2763_v5 = vadd.f32 %v368_v63, %v83_v62 }
  0x29   :  { %1846 = vmatpush1.bf16.msra.mxu0 %v2497_v24  ;;  %167 = vmatprep.mubr.f32.mxu0 %v2274_v3 }
  0x2a   :  { %1848 = vmatprep.subr.bf16.mxu0 %v2504_v26  ;;  %1557 = vmatmul.mubr.f32.vlgmr.msra.gmra.mrb[0].mxu1 %v21_v25  ;;  %v346_v25 = vld [vmem:[%s2933_s2 + $0x148] sm:$0xff] }
  0x2b   :  { %1873 = vmatpush3.bf16.msra.mxu1 %v2547_v41  ;;  %1559 = vmatprep.mubr.f32.mxu1 %v22_v34  ;;  %v2693_v27 = vpack.c.bf16 %v346_v25, %v343_v23 }
  0x2c   :  { %168 = vmatmul.mubr.f32.gmra.mrb[4].mxu0 %v22_v34  ;;  %1874 = vmatprep.subr.bf16.mxu1 %v2275_v40  ;;  %v86_v34 = vsub.s32 2, %v77_v32 }
  0x2d   :  { %1850 = vmatpush1.bf16.msra.mxu0 %v2525_v33  ;;  %173 = vmatprep.mubr.f32.mxu0 %v2274_v3 }
  0x2e   :  { %1852 = vmatprep.subr.bf16.mxu0 %v2532_v35  ;;  %1560 = vmatmul.mubr.f32.gmra.mrb[2].mxu1 %v23_v45  ;;  %v87_v37 = vrot.slane %v74_v36, %v86_v34  ;;  %v2767_v25 = vrot.slane %v353_v57, %v86_v34 }
  0x2f   :  { %1876 = vmatpush3.bf16.msra.mxu1 %v2578_v51  ;;  %1562 = vmatprep.mubr.f32.mxu1 %v24_v55 }
  0x30   :  { %174 = vmatmul.mubr.f32.gmra.mrb[6].mxu0 %v23_v45  ;;  %1877 = vmatprep.subr.bf16.mxu1 %v2275_v40 }
  0x31   :  { %1854 = vmatpush1.bf16.msra.mxu0 %v2556_v44  ;;  %179 = vmatprep.mubr.f32.mxu0 %v2274_v3 }
  0x32   :  { %1856 = vmatprep.subr.bf16.mxu0 %v2563_v46  ;;  %1563 = vmatmul.mubr.f32.gmra.mrb[4].mxu1 %v25_v1 }
  0x33   :  { %1879 = vmatpush3.bf16.msra.mxu1 %v2610_v61  ;;  %1597 = vmatprep.mubr.msk.f32.mxu1 %vm2276_vm0, %v2274_v3 }
  0x34   :  { %180 = vmatmul.mubr.f32.gmra.mrb[8].mxu0 %v24_v55  ;;  %1880 = vmatprep.subr.bf16.mxu1 %v2275_v40  ;;  %v78_v55 = vsub.s32 0, %v77_v32 }
  0x35   :  { %1858 = vmatpush1.bf16.msra.mxu0 %v2588_v54  ;;  %185 = vmatprep.mubr.f32.mxu0 %v2274_v3 }
  0x36   :  { %1860 = vmatprep.subr.bf16.mxu0 %v2595_v56  ;;  %v79_v59 = vrot.slane %v74_v36, %v78_v55  ;;  %v364_v60 = vrot.slane %v353_v57, %v78_v55 }
  0x37   :  { %1882 = vmatpush3.bf16.msra.mxu1 %v2642_v8 }
  0x38   :  { %186 = vmatmul.mubr.f32.gmra.mrb[10].mxu0 %v25_v1  ;;  %1883 = vmatprep.subr.bf16.mxu1 %v2275_v40  ;;  %v2761_v1 = vadd.f32 %v364_v60, %v79_v59 }
  0x39   :  { %1862 = vmatpush1.bf16.msra.mxu0 %v2620_v0  ;;  %440 = vmatprep.mubr.f32.mxu0 %v2274_v3 }
  0x3a   :  { %1864 = vmatprep.subr.bf16.mxu0 %v2627_v2 }
  0x3b   :  { %1885 = vmatpush3.bf16.msra.mxu1 %v2667_v16 }
  0x3c   :  { %1886 = vmatprep.subr.bf16.mxu1 %v2275_v40 }
  0x3d   :  { %1866 = vmatpush1.bf16.msra.mxu0 %v2654_v12 }
  0x3e   :  { %1868 = vmatprep.subr.bf16.mxu0 %v2658_v13 }
  0x3f   :  { %1888 = vmatpush3.bf16.msra.mxu1 %v2681_v22 }
  0x40   :  { %1889 = vmatprep.subr.bf16.mxu1 %v2275_v40 }
  0x41   :  { %1870 = vmatpush1.bf16.msra.mxu0 %v2677_v21 }
  0x42   :  { %1896 = vmatprep.subr.bf16.mxu0 %v2458_v9 }
  0x43   :  { %1891 = vmatpush3.bf16.msra.mxu1 %v2693_v27 }
  0x44   :  { %441 = vmatmul.mubr.f32.vlgmr.msra.gmra.mrb[0].mxu0 %v2274_v3  ;;  %1892 = vmatprep.subr.bf16.mxu1 %v2275_v40 }
  0x45   :  { %1898 = vmatpush1.bf16.msra.mxu0 %v2478_v17  ;;  %608 = vmatprep.mubr.f32.mxu0 %v2274_v3 }
  0x46   :  { %1900 = vmatprep.subr.bf16.mxu0 %v2481_v18 }
  0x47   :  { %1894 = vmatpush3.bf16.msra.mxu1 %v2707_v30 }
  0x48   :  { %1927 = vmatprep.subr.bf16.mxu1 %v2275_v40 }
  0x49   :  { %1902 = vmatpush1.bf16.msra.mxu0 %v2497_v24 }
  0x4a   :  { %1904 = vmatprep.subr.bf16.mxu0 %v2504_v26  ;;  %1598 = vmatmul.mubr.f32.vlgmr.msra.gmra.mrb[6].mxu1 %v2274_v3 }
  0x4b   :  { %1929 = vmatpush3.bf16.msra.mxu1 %v2547_v41  ;;  %1632 = vmatprep.mubr.msk.f32.mxu1 %vm2276_vm0, %v2274_v3 }
  0x4c   :  { %1930 = vmatprep.subr.bf16.mxu1 %v2275_v40 }
  0x4d   :  { %1906 = vmatpush1.bf16.msra.mxu0 %v2525_v33 }
  0x4e   :  { %1908 = vmatprep.subr.bf16.mxu0 %v2532_v35 }
  0x4f   :  { %1932 = vmatpush3.bf16.msra.mxu1 %v2578_v51 }
  0x50   :  { %1933 = vmatprep.subr.bf16.mxu1 %v2275_v40 }
  0x51   :  { %1910 = vmatpush1.bf16.msra.mxu0 %v2556_v44 }
  0x52   :  { %1912 = vmatprep.subr.bf16.mxu0 %v2563_v46 }
  0x53   :  { %1935 = vmatpush3.bf16.msra.mxu1 %v2610_v61 }
  0x54   :  { %1936 = vmatprep.subr.bf16.mxu1 %v2275_v40 }
  0x55   :  { %1914 = vmatpush1.bf16.msra.mxu0 %v2588_v54 }
  0x56   :  { %1916 = vmatprep.subr.bf16.mxu0 %v2595_v56 }
  0x57   :  { %1938 = vmatpush3.bf16.msra.mxu1 %v2642_v8 }
  0x58   :  { %1939 = vmatprep.subr.bf16.mxu1 %v2275_v40 }
  0x59   :  { %1918 = vmatpush1.bf16.msra.mxu0 %v2620_v0 }
  0x5a   :  { %1920 = vmatprep.subr.bf16.mxu0 %v2627_v2 }
  0x5b   :  { %1941 = vmatpush3.bf16.msra.mxu1 %v2667_v16 }
  0x5c   :  { %1942 = vmatprep.subr.bf16.mxu1 %v2275_v40 }
  0x5d   :  { %1922 = vmatpush1.bf16.msra.mxu0 %v2654_v12 }
  0x5e   :  { %1924 = vmatprep.subr.bf16.mxu0 %v2658_v13 }
  0x5f   :  { %1944 = vmatpush3.bf16.msra.mxu1 %v2681_v22 }
  0x60   :  { %1945 = vmatprep.subr.bf16.mxu1 %v2275_v40 }
  0x61   :  { %1926 = vmatpush1.bf16.msra.mxu0 %v2677_v21 }
  0x62   :  { %1952 = vmatprep.subr.bf16.mxu0 %v2458_v9 }
  0x63   :  { %1947 = vmatpush3.bf16.msra.mxu1 %v2693_v27 }
  0x64   :  { %1948 = vmatprep.subr.bf16.mxu1 %v2275_v40 }
  0x67   :  { %1950 = vmatpush3.bf16.msra.mxu1 %v2707_v30 }
  0x68   :  { %1983 = vmatprep.subr.bf16.mxu1 %v2275_v40 }
  0xfd   :  { %v1558_v38 = vpop.f32.mrb[0].mxu1 }
  0xfe   :  { %v2748_v39 = vadd.f32 %v1558_v38, %v87_v37  ;;  %v258_v42 = vpop.f32.mrb[1].mxu1 }
  0xff   :  { %v259_v36 = vadd.f32 %v258_v42, %v87_v37 }
 0x101   :  { %v1561_v43 = vpop.f32.mrb[2].mxu1 }
 0x102   :  { %v2750_v45 = vadd.f32 %v1561_v43, %v87_v37  ;;  %v268_v47 = vpop.f32.mrb[3].mxu1 }
 0x103   :  { %v2752_v48 = vadd.f32 %v268_v47, %v87_v37 }
 0x105   :  { %v1564_v49 = vpop.f32.mrb[4].mxu1 }
 0x106   :  { %v2754_v50 = vadd.f32 %v1564_v49, %v87_v37  ;;  %v278_v52 = vpop.f32.mrb[5].mxu1 }
 0x107   :  { %v2756_v53 = vadd.f32 %v278_v52, %v87_v37 }
 0x117   :  { %v442_v4 = vpop.f32.mrb[0].mxu0 }
 0x118   :  { %v2176_v6 = vadd.f32 %v2761_v1, %v442_v4  ;;  %v444_v7 = vpop.f32.mrb[1].mxu0 }
 0x119   :  { %v2178_v11 = vadd.f32 %v2763_v5, %v444_v7 }
 0x11a   :  { %v1388_v10 = vmul.f32 -1.442695, %v2176_v6 }
 0x11b   :  { %v1389_v14 = vmul.f32 -1.442695, %v2178_v11 }
 0x11c   :  { %2214 = vpow2.f32 %v1388_v10 }
 0x11d   :  { %v513_v15 = vpop.f32.mrb[6].mxu1  ;;  %2216 = vpow2.f32 %v1389_v14 }
 0x11e   :  { %v1599_v19 = vpop.f32.mrb[7].mxu1  ;;  %v514_v31 = vadd.f32 %v513_v15, %v2767_v25 }
 0x126   :  { %v2215_v20 = vpop.eup %2214 }
 0x127   :  { %v521_v23 = vadd.f32 1.0, %v2215_v20  ;;  %v2217_v28 = vpop.eup %2216 }
 0x128   :  { %v528_v29 = vadd.f32 1.0, %v2217_v28 }
 0x129   :  { %2218 = vrcp.f32 %v521_v23 }
 0x12a   :  { %2220 = vrcp.f32 %v528_v29 }
 0x133   :  { %v2219_v32 = vpop.eup %2218 }
 0x134   :  { %v531_v38 = vmul.f32 %v2219_v32, %v514_v31  ;;  %v2221_v47 = vpop.eup %2220 }
 0x135   :  { %v534_v49 = vsub.f32 1.0, %v2221_v47  ;;  %v536_v58 = vmul.f32 0.0, %v2221_v47 }
 0x136   :  { %v532_v43 = vadd.f32 %v531_v38, %v259_v36 }
 0x138   :  { %2222 = vtanh.f32 %v532_v43 }
 0x142   :  { %v2223_v52 = vpop.eup %2222 }
 0x143   :  { %v535_v55 = vmul.f32 %v2223_v52, %v534_v49 }
 0x145   :  { %v537_v59 = vadd.f32 %v536_v58, %v535_v55 }
 0x147   :  { %609 = vmatmul.mubr.f32.vlgmr.msra.gmra.mrb[2].mxu0 %v537_v59  ;;  %1633 = vmatmul.mubr.f32.vlgmr.msra.gmra.mrb[8].mxu1 %v537_v59 }
 0x148   :  { %1954 = vmatpush1.bf16.msra.mxu0 %v2478_v17  ;;  %1985 = vmatpush3.bf16.msra.mxu1 %v2547_v41 }
 0x149   :  { %1956 = vmatprep.subr.bf16.mxu0 %v2481_v18  ;;  %1986 = vmatprep.subr.bf16.mxu1 %v2275_v40 }
 0x14a   :  { %776 = vmatprep.mubr.f32.mxu0 %v2274_v3  ;;  %1667 = vmatprep.mubr.msk.f32.mxu1 %vm2276_vm0, %v2274_v3 }
 0x14c   :  { %1958 = vmatpush1.bf16.msra.mxu0 %v2497_v24  ;;  %1988 = vmatpush3.bf16.msra.mxu1 %v2578_v51 }
 0x14d   :  { %1960 = vmatprep.subr.bf16.mxu0 %v2504_v26  ;;  %1989 = vmatprep.subr.bf16.mxu1 %v2275_v40 }
 0x150   :  { %1962 = vmatpush1.bf16.msra.mxu0 %v2525_v33  ;;  %1991 = vmatpush3.bf16.msra.mxu1 %v2610_v61 }
 0x151   :  { %1964 = vmatprep.subr.bf16.mxu0 %v2532_v35  ;;  %1992 = vmatprep.subr.bf16.mxu1 %v2275_v40 }
 0x154   :  { %1966 = vmatpush1.bf16.msra.mxu0 %v2556_v44  ;;  %1994 = vmatpush3.bf16.msra.mxu1 %v2642_v8 }
 0x155   :  { %1968 = vmatprep.subr.bf16.mxu0 %v2563_v46  ;;  %1995 = vmatprep.subr.bf16.mxu1 %v2275_v40 }
 0x158   :  { %1970 = vmatpush1.bf16.msra.mxu0 %v2588_v54  ;;  %1997 = vmatpush3.bf16.msra.mxu1 %v2667_v16 }
 0x159   :  { %1972 = vmatprep.subr.bf16.mxu0 %v2595_v56  ;;  %1998 = vmatprep.subr.bf16.mxu1 %v2275_v40 }
 0x15c   :  { %1974 = vmatpush1.bf16.msra.mxu0 %v2620_v0  ;;  %2000 = vmatpush3.bf16.msra.mxu1 %v2681_v22 }
 0x15d   :  { %1976 = vmatprep.subr.bf16.mxu0 %v2627_v2  ;;  %2001 = vmatprep.subr.bf16.mxu1 %v2275_v40 }
 0x160   :  { %1978 = vmatpush1.bf16.msra.mxu0 %v2654_v12  ;;  %2003 = vmatpush3.bf16.msra.mxu1 %v2693_v27 }
 0x161   :  { %1980 = vmatprep.subr.bf16.mxu0 %v2658_v13  ;;  %2004 = vmatprep.subr.bf16.mxu1 %v2275_v40 }
 0x164   :  { %1982 = vmatpush1.bf16.msra.mxu0 %v2677_v21  ;;  %2006 = vmatpush3.bf16.msra.mxu1 %v2707_v30 }
 0x165   :  { %2008 = vmatprep.subr.bf16.mxu0 %v2458_v9  ;;  %2039 = vmatprep.subr.bf16.mxu1 %v2275_v40 }
 0x21a   :  { %v610_v34 = vpop.f32.mrb[2].mxu0  ;;  %v681_v37 = vpop.f32.mrb[8].mxu1 }
 0x21b   :  { %v2180_v42 = vadd.f32 %v2761_v1, %v610_v34  ;;  %v612_v57 = vpop.f32.mrb[3].mxu0  ;;  %v1634_v60 = vpop.f32.mrb[9].mxu1  ;;  %v682_v14 = vadd.f32 %v681_v37, %v2767_v25 }
 0x21c   :  { %v2182_v63 = vadd.f32 %v2763_v5, %v612_v57 }
 0x21d   :  { %v1390_v62 = vmul.f32 -1.442695, %v2180_v42 }
 0x21e   :  { %v1391_v4 = vmul.f32 -1.442695, %v2182_v63 }
 0x21f   :  { %2224 = vpow2.f32 %v1390_v62 }
 0x220   :  { %2226 = vpow2.f32 %v1391_v4 }
 0x229   :  { %v2225_v6 = vpop.eup %2224 }
 0x22a   :  { %v689_v7 = vadd.f32 1.0, %v2225_v6  ;;  %v2227_v10 = vpop.eup %2226 }
 0x22b   :  { %v696_v11 = vadd.f32 1.0, %v2227_v10 }
 0x22c   :  { %2228 = vrcp.f32 %v689_v7 }
 0x22d   :  { %2230 = vrcp.f32 %v696_v11 }
 0x236   :  { %v2229_v15 = vpop.eup %2228 }
 0x237   :  { %v699_v19 = vmul.f32 %v2229_v15, %v682_v14  ;;  %v2231_v23 = vpop.eup %2230 }
 0x238   :  { %v702_v28 = vsub.f32 1.0, %v2231_v23  ;;  %v704_v32 = vmul.f32 %v2231_v23, %v537_v59 }
 0x239   :  { %v700_v20 = vadd.f32 %v699_v19, %v2748_v39 }
 0x23b   :  { %2232 = vtanh.f32 %v700_v20 }
 0x245   :  { %v2233_v29 = vpop.eup %2232 }
 0x246   :  { %v703_v31 = vmul.f32 %v2233_v29, %v702_v28 }
 0x248   :  { %v705_v36 = vadd.f32 %v704_v32, %v703_v31 }
 0x24a   :  { %777 = vmatmul.mubr.f32.vlgmr.msra.gmra.mrb[4].mxu0 %v705_v36  ;;  %1668 = vmatmul.mubr.f32.vlgmr.msra.gmra.mrb[10].mxu1 %v705_v36 }
 0x24b   :  { %2010 = vmatpush1.bf16.msra.mxu0 %v2478_v17  ;;  %2041 = vmatpush3.bf16.msra.mxu1 %v2547_v41 }
 0x24c   :  { %2012 = vmatprep.subr.bf16.mxu0 %v2481_v18  ;;  %2042 = vmatprep.subr.bf16.mxu1 %v2275_v40 }
 0x24d   :  { %944 = vmatprep.mubr.f32.mxu0 %v2274_v3  ;;  %1702 = vmatprep.mubr.msk.f32.mxu1 %vm2276_vm0, %v2274_v3 }
 0x24f   :  { %2014 = vmatpush1.bf16.msra.mxu0 %v2497_v24  ;;  %2044 = vmatpush3.bf16.msra.mxu1 %v2578_v51 }
 0x250   :  { %2016 = vmatprep.subr.bf16.mxu0 %v2504_v26  ;;  %2045 = vmatprep.subr.bf16.mxu1 %v2275_v40 }
 0x253   :  { %2018 = vmatpush1.bf16.msra.mxu0 %v2525_v33  ;;  %2047 = vmatpush3.bf16.msra.mxu1 %v2610_v61 }
 0x254   :  { %2020 = vmatprep.subr.bf16.mxu0 %v2532_v35  ;;  %2048 = vmatprep.subr.bf16.mxu1 %v2275_v40 }
 0x257   :  { %2022 = vmatpush1.bf16.msra.mxu0 %v2556_v44  ;;  %2050 = vmatpush3.bf16.msra.mxu1 %v2642_v8 }
 0x258   :  { %2024 = vmatprep.subr.bf16.mxu0 %v2563_v46  ;;  %2051 = vmatprep.subr.bf16.mxu1 %v2275_v40 }
 0x25b   :  { %2026 = vmatpush1.bf16.msra.mxu0 %v2588_v54  ;;  %2053 = vmatpush3.bf16.msra.mxu1 %v2667_v16 }
 0x25c   :  { %2028 = vmatprep.subr.bf16.mxu0 %v2595_v56  ;;  %2054 = vmatprep.subr.bf16.mxu1 %v2275_v40 }
 0x25f   :  { %2030 = vmatpush1.bf16.msra.mxu0 %v2620_v0  ;;  %2056 = vmatpush3.bf16.msra.mxu1 %v2681_v22 }
 0x260   :  { %2032 = vmatprep.subr.bf16.mxu0 %v2627_v2  ;;  %2057 = vmatprep.subr.bf16.mxu1 %v2275_v40 }
 0x263   :  { %2034 = vmatpush1.bf16.msra.mxu0 %v2654_v12  ;;  %2059 = vmatpush3.bf16.msra.mxu1 %v2693_v27 }
 0x264   :  { %2036 = vmatprep.subr.bf16.mxu0 %v2658_v13  ;;  %2060 = vmatprep.subr.bf16.mxu1 %v2275_v40 }
 0x267   :  { %2038 = vmatpush1.bf16.msra.mxu0 %v2677_v21  ;;  %2062 = vmatpush3.bf16.msra.mxu1 %v2707_v30 }
 0x268   :  { %2064 = vmatprep.subr.bf16.mxu0 %v2458_v9  ;;  %2095 = vmatprep.subr.bf16.mxu1 %v2275_v40 }
 0x31d   :  { %v778_v39 = vpop.f32.mrb[4].mxu0  ;;  %v849_v38 = vpop.f32.mrb[10].mxu1 }
 0x31e   :  { %v2184_v43 = vadd.f32 %v2761_v1, %v778_v39  ;;  %v780_v47 = vpop.f32.mrb[5].mxu0  ;;  %v1669_v49 = vpop.f32.mrb[11].mxu1  ;;  %v850_v57 = vadd.f32 %v849_v38, %v2767_v25 }
 0x31f   :  { %v2186_v55 = vadd.f32 %v2763_v5, %v780_v47 }
 0x320   :  { %v1392_v52 = vmul.f32 -1.442695, %v2184_v43 }
 0x321   :  { %v1393_v58 = vmul.f32 -1.442695, %v2186_v55 }
 0x322   :  { %2234 = vpow2.f32 %v1392_v52 }
 0x323   :  { %2236 = vpow2.f32 %v1393_v58 }
 0x32c   :  { %v2235_v59 = vpop.eup %2234 }
 0x32d   :  { %v857_v34 = vadd.f32 1.0, %v2235_v59  ;;  %v2237_v37 = vpop.eup %2236 }
 0x32e   :  { %v864_v42 = vadd.f32 1.0, %v2237_v37 }
 0x32f   :  { %2238 = vrcp.f32 %v857_v34 }
 0x330   :  { %2240 = vrcp.f32 %v864_v42 }
 0x339   :  { %v2239_v60 = vpop.eup %2238 }
 0x33a   :  { %v867_v62 = vmul.f32 %v2239_v60, %v850_v57  ;;  %v2241_v4 = vpop.eup %2240 }
 0x33b   :  { %v870_v6 = vsub.f32 1.0, %v2241_v4  ;;  %v872_v11 = vmul.f32 %v2241_v4, %v705_v36 }
 0x33c   :  { %v868_v63 = vadd.f32 %v867_v62, %v2752_v48 }
 0x33e   :  { %2242 = vtanh.f32 %v868_v63 }
 0x348   :  { %v2243_v7 = vpop.eup %2242 }
 0x349   :  { %v871_v10 = vmul.f32 %v2243_v7, %v870_v6 }
 0x34b   :  { %v873_v14 = vadd.f32 %v872_v11, %v871_v10 }
 0x34d   :  { %945 = vmatmul.mubr.f32.vlgmr.msra.gmra.mrb[6].mxu0 %v873_v14  ;;  %1703 = vmatmul.mubr.f32.vlgmr.msra.gmra.mrb[12].mxu1 %v873_v14 }
 0x34e   :  { %2066 = vmatpush1.bf16.msra.mxu0 %v2478_v17  ;;  %2097 = vmatpush3.bf16.msra.mxu1 %v2547_v41 }
 0x34f   :  { %2068 = vmatprep.subr.bf16.mxu0 %v2481_v18  ;;  %2098 = vmatprep.subr.bf16.mxu1 %v2275_v40 }
 0x350   :  { %1112 = vmatprep.mubr.f32.mxu0 %v2274_v3  ;;  %1737 = vmatprep.mubr.msk.f32.mxu1 %vm2276_vm0, %v2274_v3 }
 0x352   :  { %2070 = vmatpush1.bf16.msra.mxu0 %v2497_v24  ;;  %2100 = vmatpush3.bf16.msra.mxu1 %v2578_v51 }
 0x353   :  { %2072 = vmatprep.subr.bf16.mxu0 %v2504_v26  ;;  %2101 = vmatprep.subr.bf16.mxu1 %v2275_v40 }
 0x356   :  { %2074 = vmatpush1.bf16.msra.mxu0 %v2525_v33  ;;  %2103 = vmatpush3.bf16.msra.mxu1 %v2610_v61 }
 0x357   :  { %2076 = vmatprep.subr.bf16.mxu0 %v2532_v35  ;;  %2104 = vmatprep.subr.bf16.mxu1 %v2275_v40 }
 0x35a   :  { %2078 = vmatpush1.bf16.msra.mxu0 %v2556_v44  ;;  %2106 = vmatpush3.bf16.msra.mxu1 %v2642_v8 }
 0x35b   :  { %2080 = vmatprep.subr.bf16.mxu0 %v2563_v46  ;;  %2107 = vmatprep.subr.bf16.mxu1 %v2275_v40 }
 0x35e   :  { %2082 = vmatpush1.bf16.msra.mxu0 %v2588_v54  ;;  %2109 = vmatpush3.bf16.msra.mxu1 %v2667_v16 }
 0x35f   :  { %2084 = vmatprep.subr.bf16.mxu0 %v2595_v56  ;;  %2110 = vmatprep.subr.bf16.mxu1 %v2275_v40 }
 0x362   :  { %2086 = vmatpush1.bf16.msra.mxu0 %v2620_v0  ;;  %2112 = vmatpush3.bf16.msra.mxu1 %v2681_v22 }
 0x363   :  { %2088 = vmatprep.subr.bf16.mxu0 %v2627_v2  ;;  %2113 = vmatprep.subr.bf16.mxu1 %v2275_v40 }
 0x366   :  { %2090 = vmatpush1.bf16.msra.mxu0 %v2654_v12  ;;  %2115 = vmatpush3.bf16.msra.mxu1 %v2693_v27 }
 0x367   :  { %2092 = vmatprep.subr.bf16.mxu0 %v2658_v13  ;;  %2116 = vmatprep.subr.bf16.mxu1 %v2275_v40 }
 0x36a   :  { %2094 = vmatpush1.bf16.msra.mxu0 %v2677_v21  ;;  %2118 = vmatpush3.bf16.msra.mxu1 %v2707_v30 }
 0x36b   :  { %2120 = vmatprep.subr.bf16.mxu0 %v2458_v9  ;;  %2151 = vmatprep.subr.bf16.mxu1 %v2275_v40 }
 0x420   :  { %v946_v48 = vpop.f32.mrb[6].mxu0  ;;  %v1017_v15 = vpop.f32.mrb[12].mxu1 }
 0x421   :  { %v2188_v19 = vadd.f32 %v2761_v1, %v946_v48  ;;  %v948_v20 = vpop.f32.mrb[7].mxu0  ;;  %v1704_v23 = vpop.f32.mrb[13].mxu1  ;;  %v1018_v9 = vadd.f32 %v1017_v15, %v2767_v25 }
 0x422   :  { %v2190_v29 = vadd.f32 %v2763_v5, %v948_v20 }
 0x423   :  { %v1394_v28 = vmul.f32 -1.442695, %v2188_v19 }
 0x424   :  { %v1395_v31 = vmul.f32 -1.442695, %v2190_v29 }
 0x425   :  { %2244 = vpow2.f32 %v1394_v28 }
 0x426   :  { %2246 = vpow2.f32 %v1395_v31 }
 0x42f   :  { %v2245_v32 = vpop.eup %2244 }
 0x430   :  { %v1025_v36 = vadd.f32 1.0, %v2245_v32  ;;  %v2247_v39 = vpop.eup %2246 }
 0x431   :  { %v1032_v38 = vadd.f32 1.0, %v2247_v39 }
 0x432   :  { %2248 = vrcp.f32 %v1025_v36 }
 0x433   :  { %2250 = vrcp.f32 %v1032_v38 }
 0x43c   :  { %v2249_v43 = vpop.eup %2248 }
 0x43d   :  { %v1035_v47 = vmul.f32 %v2249_v43, %v1018_v9  ;;  %v2251_v52 = vpop.eup %2250 }
 0x43e   :  { %v1038_v55 = vsub.f32 1.0, %v2251_v52  ;;  %v1040_v34 = vmul.f32 %v2251_v52, %v873_v14 }
 0x43f   :  { %v1036_v49 = vadd.f32 %v1035_v47, %v2750_v45 }
 0x441   :  { %2252 = vtanh.f32 %v1036_v49 }
 0x44b   :  { %v2253_v58 = vpop.eup %2252 }
 0x44c   :  { %v1039_v59 = vmul.f32 %v2253_v58, %v1038_v55 }
 0x44e   :  { %v1041_v37 = vadd.f32 %v1040_v34, %v1039_v59 }
 0x450   :  { %1113 = vmatmul.mubr.f32.vlgmr.msra.gmra.mrb[8].mxu0 %v1041_v37  ;;  %1738 = vmatmul.mubr.f32.vlgmr.msra.gmra.mrb[14].mxu1 %v1041_v37 }
 0x451   :  { %2122 = vmatpush1.bf16.msra.mxu0 %v2478_v17  ;;  %2153 = vmatpush3.bf16.msra.mxu1 %v2547_v41 }
 0x452   :  { %2124 = vmatprep.subr.bf16.mxu0 %v2481_v18  ;;  %2154 = vmatprep.subr.bf16.mxu1 %v2275_v40 }
 0x453   :  { %1280 = vmatprep.mubr.f32.mxu0 %v2274_v3  ;;  %1772 = vmatprep.mubr.msk.f32.mxu1 %vm2276_vm0, %v2274_v3 }
 0x455   :  { %2126 = vmatpush1.bf16.msra.mxu0 %v2497_v24  ;;  %2156 = vmatpush3.bf16.msra.mxu1 %v2578_v51 }
 0x456   :  { %2128 = vmatprep.subr.bf16.mxu0 %v2504_v26  ;;  %2157 = vmatprep.subr.bf16.mxu1 %v2275_v40 }
 0x459   :  { %2130 = vmatpush1.bf16.msra.mxu0 %v2525_v33  ;;  %2159 = vmatpush3.bf16.msra.mxu1 %v2610_v61 }
 0x45a   :  { %2132 = vmatprep.subr.bf16.mxu0 %v2532_v35  ;;  %2160 = vmatprep.subr.bf16.mxu1 %v2275_v40 }
 0x45d   :  { %2134 = vmatpush1.bf16.msra.mxu0 %v2556_v44  ;;  %2162 = vmatpush3.bf16.msra.mxu1 %v2642_v8 }
 0x45e   :  { %2136 = vmatprep.subr.bf16.mxu0 %v2563_v46  ;;  %2163 = vmatprep.subr.bf16.mxu1 %v2275_v40 }
 0x461   :  { %2138 = vmatpush1.bf16.msra.mxu0 %v2588_v54  ;;  %2165 = vmatpush3.bf16.msra.mxu1 %v2667_v16 }
 0x462   :  { %2140 = vmatprep.subr.bf16.mxu0 %v2595_v56  ;;  %2166 = vmatprep.subr.bf16.mxu1 %v2275_v40 }
 0x465   :  { %2142 = vmatpush1.bf16.msra.mxu0 %v2620_v0  ;;  %2168 = vmatpush3.bf16.msra.mxu1 %v2681_v22 }
 0x466   :  { %2144 = vmatprep.subr.bf16.mxu0 %v2627_v2  ;;  %2169 = vmatprep.subr.bf16.mxu1 %v2275_v40 }
 0x469   :  { %2146 = vmatpush1.bf16.msra.mxu0 %v2654_v12  ;;  %2171 = vmatpush3.bf16.msra.mxu1 %v2693_v27 }
 0x46a   :  { %2148 = vmatprep.subr.bf16.mxu0 %v2658_v13  ;;  %2172 = vmatprep.subr.bf16.mxu1 %v2275_v40 }
 0x46d   :  { %2150 = vmatpush1.bf16.msra.mxu0 %v2677_v21  ;;  %2174 = vmatpush3.bf16.msra.mxu1 %v2707_v30 }
 0x523   :  { %v1114_v3 = vpop.f32.mrb[8].mxu0  ;;  %v1185_v17 = vpop.f32.mrb[14].mxu1 }
 0x524   :  { %v2192_v18 = vadd.f32 %v2761_v1, %v1114_v3  ;;  %v1116_v24 = vpop.f32.mrb[9].mxu0  ;;  %v1739_v26 = vpop.f32.mrb[15].mxu1  ;;  %v1186_v54 = vadd.f32 %v1185_v17, %v2767_v25 }
 0x525   :  { %v2194_v35 = vadd.f32 %v2763_v5, %v1116_v24 }
 0x526   :  { %v1396_v33 = vmul.f32 -1.442695, %v2192_v18 }
 0x527   :  { %v1397_v41 = vmul.f32 -1.442695, %v2194_v35 }
 0x528   :  { %2254 = vpow2.f32 %v1396_v33 }
 0x529   :  { %2256 = vpow2.f32 %v1397_v41 }
 0x532   :  { %v2255_v44 = vpop.eup %2254 }
 0x533   :  { %v1193_v46 = vadd.f32 1.0, %v2255_v44  ;;  %v2257_v40 = vpop.eup %2256 }
 0x534   :  { %v1200_v51 = vadd.f32 1.0, %v2257_v40 }
 0x535   :  { %2258 = vrcp.f32 %v1193_v46 }
 0x536   :  { %2260 = vrcp.f32 %v1200_v51 }
 0x53f   :  { %v2259_v56 = vpop.eup %2258 }
 0x540   :  { %v1203_v61 = vmul.f32 %v2259_v56, %v1186_v54  ;;  %v2261_v2 = vpop.eup %2260 }
 0x541   :  { %v1206_v8 = vsub.f32 1.0, %v2261_v2  ;;  %v1208_v16 = vmul.f32 %v2261_v2, %v1041_v37 }
 0x542   :  { %v1204_v0 = vadd.f32 %v1203_v61, %v2756_v53 }
 0x544   :  { %2262 = vtanh.f32 %v1204_v0 }
 0x54e   :  { %v2263_v12 = vpop.eup %2262 }
 0x54f   :  { %v1207_v13 = vmul.f32 %v2263_v12, %v1206_v8 }
 0x551   :  { %v1209_v21 = vadd.f32 %v1208_v16, %v1207_v13 }
 0x553   :  { %1281 = vmatmul.mubr.f32.vlgmr.msra.gmra.mrb[10].mxu0 %v1209_v21  ;;  %1773 = vmatmul.mubr.f32.vlgmr.msra.gmra.mrb[16].mxu1 %v1209_v21 }
 0x626   :  { %v1282_v22 = vpop.f32.mrb[10].mxu0  ;;  %v1353_v27 = vpop.f32.mrb[16].mxu1 }
 0x627   :  { %v2196_v30 = vadd.f32 %v2761_v1, %v1282_v22  ;;  %v1284_v45 = vpop.f32.mrb[11].mxu0  ;;  %v1774_v42 = vpop.f32.mrb[17].mxu1  ;;  %v1354_v7 = vadd.f32 %v1353_v27, %v2767_v25 }
 0x628   :  { %v2198_v60 = vadd.f32 %v2763_v5, %v1284_v45 }
 0x629   :  { %v1398_v57 = vmul.f32 -1.442695, %v2196_v30 }
 0x62a   :  { %v1399_v53 = vmul.f32 -1.442695, %v2198_v60 }
 0x62b   :  { %2264 = vpow2.f32 %v1398_v57 }
 0x62c   :  { %2266 = vpow2.f32 %v1399_v53 }
 0x635   :  { %v2265_v62 = vpop.eup %2264 }
 0x636   :  { %v1361_v63 = vadd.f32 1.0, %v2265_v62  ;;  %v2267_v4 = vpop.eup %2266 }
 0x637   :  { %v1368_v6 = vadd.f32 1.0, %v2267_v4 }
 0x638   :  { %2268 = vrcp.f32 %v1361_v63 }
 0x639   :  { %2270 = vrcp.f32 %v1368_v6 }
 0x642   :  { %v2269_v10 = vpop.eup %2268 }
 0x643   :  { %v1371_v11 = vmul.f32 %v2269_v10, %v1354_v7  ;;  %v2271_v14 = vpop.eup %2270 }
 0x644   :  { %v1374_v48 = vsub.f32 1.0, %v2271_v14  ;;  %v1376_v19 = vmul.f32 %v2271_v14, %v1209_v21 }
 0x645   :  { %v1372_v1 = vadd.f32 %v1371_v11, %v2754_v50 }
 0x647   :  { %2272 = vtanh.f32 %v1372_v1 }
 0x651   :  { %v2273_v15 = vpop.eup %2272 }
 0x652   :  { %v1375_v5 = vmul.f32 %v2273_v15, %v1374_v48 }
 0x654   :  { %v1377_v20 = vadd.f32 %v1376_v19, %v1375_v5 }
 0x656   :  { %1378 = vst [vmem:[%s2936_s5] sm:$0xff] %v1377_v20 }

// kernel: seq2seq_forward.3
= control target key start
LH: loop header
LB: loop body
LE: loop exit
PB: predicated region body
PF: predicated region fallthrough
CT: control target
= control target key end

     0   :  { %s2034_s0 = inlined_call_operand.vmem [shape: s32[6], index: 0, kind: input, shape index: {}]   ;;  %s2035_s1 = inlined_call_operand.vmem [shape: f32[8,128], index: 1, kind: input, shape index: {}]   ;;  %s2036_s2 = inlined_call_operand.vmem [shape: f32[6,8,128], index: 2, kind: input, shape index: {}]   ;;  %s2037_s3 = inlined_call_operand.vmem [shape: f32[128,128], index: 3, kind: input, shape index: {}]   ;;  %s2038_s4 = inlined_call_operand.vmem [shape: f32[128,384], index: 4, kind: input, shape index: {}]   ;;  %s2039_s5 = inlined_call_operand.vmem [shape: f32[128,384], index: 5, kind: input, shape index: {}]   ;;  %s2040_s6 = inlined_call_operand.vmem [shape: f32[1,384], index: 6, kind: input, shape index: {}]   ;;  %s2041_s7 = inlined_call_operand.vmem [shape: f32[1,384], index: 7, kind: input, shape index: {}]   ;;  %s2042_s8 = inlined_call_operand.vmem [shape: f32[128,128], index: 8, kind: input, shape index: {}]   ;;  %s2043_s9 = inlined_call_operand.vmem [shape: f32[1,128], index: 9, kind: input, shape index: {}]   ;;  %s2044_s10 = inlined_call_operand.vmem [shape: f32[6,8,128], index: 10, kind: output, shape index: {}]  }
   0x1   :  { %s15_s15 = sshll.u32 %s2034_s0, 4  ;;  %s16_s15 = int_to_ptr.vmem [resolvable:$true] %s15_s15 }
   0x2   :  { %s1460_s16 = scalar_lea.vmem %s16_s15, 16  ;;  %p1465_p1 = scmp.lt.s32.totalorder %s16_s15, %s16_s15 }
   0x3   :  { %p1461_p0 = scmp.ne.s32.totalorder %s16_s15, %s1460_s16  ;;  %p1466_p2 = scmp.lt.s32.totalorder %s1460_s16, %s1460_s16 }
   0x5   :  { %p1467_p3 = por %p1466_p2, %p1465_p1 }
   0x7   :  { %p1468_p4 = pnand %p1467_p3, %p1461_p0 }
   0x9   :  { %1471 = shalt.err (!%p1468_p4)  }
   0xa   :  { %s1482_s17 = smov [#allocation5]  }
   0xb   :  { %18 = dma.vmem_to_smem %s16_s15, 16, %s1482_s17, [#allocation4] }
   0xc   :  { %1476 = dma.done.wait [#allocation4], 16 }
   0xd   :  { %1477 = vsyncadd [#allocation4], 4294967280 }
   0xe   :  { %20 = sfence }
   0xf   :  { %s1546_s18 = smov 0  }
  0x10 LB: > { %s1552_s0 = sadd.s32 4294967295, %s1480_s18   ;;  %p1051_p5 = scmp.ge.s32.totalorder %s1480_s18, 1  ;;  %s1480_s18 = sphi %s1546_s18, %s26_s18  }
  0x11   : > { %p293_p6 = scmp.lt.s32.totalorder %s1480_s18, 7 }
  0x13   : > { %p294_p7 = pnand %p1051_p5, %p293_p6 }
  0x14   : > { %p327_p8 = scmp.lt.s32.totalorder (!%p294_p7), %s1552_s0, 5  ;;  %p335_p9 = scmp.eq.s32.totalorder (!%p294_p7), %s1552_s0, 0 }
  0x15   : > { %297 = sbr.rel (%p294_p7) target bundleno = 1228 (0x4cc), region = 56  ;;  %p1054_p10 = scmp.ne.s32.totalorder (!%p294_p7), %s1552_s0, 0 }
  0x1c   : > { %s328_s19 = scalar_select %p327_p8, %s1552_s0, 5 }
  0x1d   : > { %338 = sbr.rel (%p1054_p10) target bundleno = 36 (0x24), region = 60  ;;  %v339_v0 = vld [vmem:[%s2035_s1] sm:$0xff] (!%p1054_p10)  ;;  %v1483_v1 = vmov (!%p1054_p10), 0.0  }
  0x1e   : > { %s1052_s20 = sshll.u32 %s328_s19, 3  ;;  %340 = vst [vmem:[#allocation2] sm:$0xff] (!%p1054_p10), %v339_v0  ;;  %341 = vst [vmem:[#allocation3] sm:$0xff] (!%p1054_p10), %v1483_v1 }
  0x1f   : > { %s1562_s23 = scalar_lea.vmem %s2036_s2, %s1052_s20  ;;  %s1567_s26 = scalar_lea.vmem %s2044_s10, %s1052_s20 }
  0x24 PF: > { %v357_v2 = vld [vmem:[%s2038_s4 + $0x8] sm:$0xff]  ;;  %v360_v3 = vld [vmem:[%s2038_s4 + $0x20] sm:$0xff]  ;;  %s1583_s15 = sld [smem:[#allocation5 + %s1552_s0]]  ;;  %v359_v6 = vld [vmem:[%s2038_s4 + $0x18] sm:$0xff]  ;;  %v1484_v9 = vmov 0.0|0.0   ;;  %v1485_v10 = vmov 0.0  }
  0x25   : > { %v356_v4 = vld [vmem:[%s2038_s4] sm:$0xff]  ;;  %v1270_v5 = vpack.c.bf16 %v360_v3, %v357_v2  ;;  %v363_v7 = vld [vmem:[%s2038_s4 + $0x38] sm:$0xff]  ;;  %v366_v8 = vld [vmem:[%s2038_s4 + $0x50] sm:$0xff]  ;;  %1302 = vmatprep.subr.bf16.mxu1 %v1484_v9  ;;  %485 = vmatprep.mubr.f32.mxu0 %v1485_v10  ;;  %vm1486_vm0 = vmmov 0  }
  0x26   : > { %v1272_v11 = vpack.c.bf16 %v359_v6, %v356_v4  ;;  %v1274_v12 = vpack.c.bf16 %v366_v8, %v363_v7  ;;  %v362_v13 = vld [vmem:[%s2038_s4 + $0x30] sm:$0xff]  ;;  %v365_v14 = vld [vmem:[%s2038_s4 + $0x48] sm:$0xff]  ;;  %1162 = vmatprep.mubr.msk.f32.mxu1 %vm1486_vm0, %v1485_v10  ;;  %v372_v16 = vld [vmem:[%s2038_s4 + $0x80] sm:$0xff] }
  0x27   : > { %v369_v15 = vld [vmem:[%s2038_s4 + $0x68] sm:$0xff]  ;;  %1271 = vmatprep.subr.bf16.mxu0 %v1270_v5  ;;  %v1276_v17 = vpack.c.bf16 %v365_v14, %v362_v13  ;;  %v368_v19 = vld [vmem:[%s2038_s4 + $0x60] sm:$0xff]  ;;  %v371_v20 = vld [vmem:[%s2038_s4 + $0x78] sm:$0xff] }
  0x28   : > { %1273 = vmatpush1.bf16.msra.mxu0 %v1272_v11  ;;  %v1278_v18 = vpack.c.bf16 %v372_v16, %v369_v15  ;;  %v375_v21 = vld [vmem:[%s2038_s4 + $0x98] sm:$0xff]  ;;  %v378_v22 = vld [vmem:[%s2038_s4 + $0xb0] sm:$0xff]  ;;  %v1280_v23 = vpack.c.bf16 %v371_v20, %v368_v19  ;;  %v377_v26 = vld [vmem:[%s2038_s4 + $0xa8] sm:$0xff] }
  0x29   : > { %1275 = vmatprep.subr.bf16.mxu0 %v1274_v12  ;;  %v374_v24 = vld [vmem:[%s2038_s4 + $0x90] sm:$0xff]  ;;  %v1282_v25 = vpack.c.bf16 %v378_v22, %v375_v21  ;;  %v361_v28 = vld [vmem:[%s2038_s4 + $0x28] sm:$0xff]  ;;  %v384_v30 = vld [vmem:[%s2038_s4 + $0xe0] sm:$0xff] }
  0x2a   : > { %p343_p11 = scmp.ne.s32.totalorder %s1583_s15, 0  ;;  %v358_v27 = vld [vmem:[%s2038_s4 + $0x10] sm:$0xff]  ;;  %v381_v29 = vld [vmem:[%s2038_s4 + $0xc8] sm:$0xff]  ;;  %v364_v32 = vld [vmem:[%s2038_s4 + $0x40] sm:$0xff]  ;;  %v1284_v34 = vpack.c.bf16 %v377_v26, %v374_v24 }
  0x2b   : > { %v1303_v31 = vpack.c.bf16 %v361_v28, %v358_v27  ;;  %v367_v33 = vld [vmem:[%s2038_s4 + $0x58] sm:$0xff]  ;;  %v1286_v36 = vpack.c.bf16 %v384_v30, %v381_v29  ;;  %v380_v37 = vld [vmem:[%s2038_s4 + $0xc0] sm:$0xff]  ;;  %v390_v40 = vld [vmem:[%s2038_s4 + $0x110] sm:$0xff] }
  0x2c   : > { %1277 = vmatpush1.bf16.msra.mxu0 %v1276_v17  ;;  %p1628_p12 = por %p343_p11, %p335_p9  ;;  %v1306_v35 = vpack.c.bf16 %v367_v33, %v364_v32  ;;  %v383_v38 = vld [vmem:[%s2038_s4 + $0xd8] sm:$0xff]  ;;  %v370_v41 = vld [vmem:[%s2038_s4 + $0x70] sm:$0xff]  ;;  %v373_v42 = vld [vmem:[%s2038_s4 + $0x88] sm:$0xff] }
  0x2d   : > { %1279 = vmatprep.subr.bf16.mxu0 %v1278_v18  ;;  %1304 = vmatpush3.bf16.msra.mxu1 %v1303_v31  ;;  %v387_v39 = vld [vmem:[%s2038_s4 + $0xf8] sm:$0xff]  ;;  %v1288_v43 = vpack.c.bf16 %v383_v38, %v380_v37  ;;  %v386_v44 = vld [vmem:[%s2038_s4 + $0xf0] sm:$0xff]  ;;  %v1309_v45 = vpack.c.bf16 %v373_v42, %v370_v41  ;;  %v389_v47 = vld [vmem:[%s2038_s4 + $0x108] sm:$0xff] }
  0x2e   : > { %s345_s22 = scalar_select %p1628_p12, 1, 0  ;;  %1305 = vmatprep.subr.bf16.mxu1 %v1484_v9  ;;  %v1290_v46 = vpack.c.bf16 %v390_v40, %v387_v39  ;;  %v376_v48 = vld [vmem:[%s2038_s4 + $0xa0] sm:$0xff]  ;;  %v379_v49 = vld [vmem:[%s2038_s4 + $0xb8] sm:$0xff]  ;;  %v393_v50 = vld [vmem:[%s2038_s4 + $0x128] sm:$0xff]  ;;  %v1292_v52 = vpack.c.bf16 %v389_v47, %v386_v44 }
  0x2f   : > { %v396_v51 = vld [vmem:[%s2038_s4 + $0x140] sm:$0xff]  ;;  %v1312_v54 = vpack.c.bf16 %v379_v49, %v376_v48  ;;  %v395_v56 = vld [vmem:[%s2038_s4 + $0x138] sm:$0xff]  ;;  %v382_v57 = vld [vmem:[%s2038_s4 + $0xd0] sm:$0xff] }
  0x30   : > { %1281 = vmatpush1.bf16.msra.mxu0 %v1280_v23  ;;  %s1677_s19 = scvt.s32.f32 %s345_s22  ;;  %v392_v53 = vld [vmem:[%s2038_s4 + $0x120] sm:$0xff]  ;;  %v1294_v55 = vpack.c.bf16 %v396_v51, %v393_v50  ;;  %v385_v58 = vld [vmem:[%s2038_s4 + $0xe8] sm:$0xff]  ;;  %v399_v59 = vld [vmem:[%s2038_s4 + $0x158] sm:$0xff] }
  0x31   : > { %1283 = vmatprep.subr.bf16.mxu0 %v1282_v25  ;;  %1307 = vmatpush3.bf16.msra.mxu1 %v1306_v35  ;;  %v402_v60 = vld [vmem:[%s2038_s4 + $0x170] sm:$0xff]  ;;  %v1296_v61 = vpack.c.bf16 %v395_v56, %v392_v53  ;;  %v347_v63 = vld [vmem:[%s1562_s23] sm:$0xff]  ;;  %v351_v1 = vld [vmem:[#allocation3] sm:$0xff]  ;;  %v1315_v3 = vpack.c.bf16 %v385_v58, %v382_v57 }
  0x32   : > { %1308 = vmatprep.subr.bf16.mxu1 %v1484_v9  ;;  %s350_s0 = ssub.f32 1.0, %s1677_s19  ;;  %v398_v62 = vld [vmem:[%s2038_s4 + $0x150] sm:$0xff]  ;;  %v348_v0 = vstv %s1677_s19  ;;  %v1298_v4 = vpack.c.bf16 %v402_v60, %v399_v59  ;;  %v401_v5 = vld [vmem:[%s2038_s4 + $0x168] sm:$0xff]  ;;  %v388_v6 = vld [vmem:[%s2038_s4 + $0x100] sm:$0xff] }
  0x33   : > { %v391_v7 = vld [vmem:[%s2038_s4 + $0x118] sm:$0xff]  ;;  %v563_v8 = vld [vmem:[%s2039_s5 + $0x8] sm:$0xff]  ;;  %v566_v11 = vld [vmem:[%s2039_s5 + $0x20] sm:$0xff]  ;;  %v349_v12 = vmul.f32 %v348_v0, %v347_v63  ;;  %v1300_v14 = vpack.c.bf16 %v401_v5, %v398_v62 }
  0x34   : > { %1285 = vmatpush1.bf16.msra.mxu0 %v1284_v34  ;;  %v352_v2 = vstv %s350_s0  ;;  %v562_v15 = vld [vmem:[%s2039_s5] sm:$0xff]  ;;  %v1318_v16 = vpack.c.bf16 %v391_v7, %v388_v6  ;;  %v1326_v17 = vpack.c.bf16 %v566_v11, %v563_v8  ;;  %v565_v18 = vld [vmem:[%s2039_s5 + $0x18] sm:$0xff]  ;;  %v394_v19 = vld [vmem:[%s2038_s4 + $0x130] sm:$0xff] }
  0x35   : > { %1287 = vmatprep.subr.bf16.mxu0 %v1286_v36  ;;  %1310 = vmatpush3.bf16.msra.mxu1 %v1309_v45  ;;  %v353_v13 = vmul.f32 %v352_v2, %v351_v1  ;;  %v397_v20 = vld [vmem:[%s2038_s4 + $0x148] sm:$0xff]  ;;  %v569_v21 = vld [vmem:[%s2039_s5 + $0x38] sm:$0xff]  ;;  %v572_v22 = vld [vmem:[%s2039_s5 + $0x50] sm:$0xff]  ;;  %v1328_v24 = vpack.c.bf16 %v565_v18, %v562_v15 }
  0x36   : > { %1311 = vmatprep.subr.bf16.mxu1 %v1484_v9  ;;  %v568_v25 = vld [vmem:[%s2039_s5 + $0x30] sm:$0xff]  ;;  %v1321_v26 = vpack.c.bf16 %v397_v20, %v394_v19  ;;  %v1330_v27 = vpack.c.bf16 %v572_v22, %v569_v21  ;;  %v571_v28 = vld [vmem:[%s2039_s5 + $0x48] sm:$0xff]  ;;  %v400_v29 = vld [vmem:[%s2038_s4 + $0x160] sm:$0xff] }
  0x37   : > { %v354_v23 = vadd.f32 %v353_v13, %v349_v12  ;;  %v403_v30 = vld [vmem:[%s2038_s4 + $0x178] sm:$0xff]  ;;  %v575_v31 = vld [vmem:[%s2039_s5 + $0x68] sm:$0xff]  ;;  %v578_v32 = vld [vmem:[%s2039_s5 + $0x80] sm:$0xff]  ;;  %v1332_v33 = vpack.c.bf16 %v571_v28, %v568_v25 }
  0x38   : > { %1289 = vmatpush1.bf16.msra.mxu0 %v1288_v43  ;;  %v574_v34 = vld [vmem:[%s2039_s5 + $0x60] sm:$0xff]  ;;  %v1324_v35 = vpack.c.bf16 %v403_v30, %v400_v29  ;;  %v1334_v36 = vpack.c.bf16 %v578_v32, %v575_v31  ;;  %v577_v37 = vld [vmem:[%s2039_s5 + $0x78] sm:$0xff]  ;;  %v564_v38 = vld [vmem:[%s2039_s5 + $0x10] sm:$0xff] }
  0x39   : > { %1291 = vmatprep.subr.bf16.mxu0 %v1290_v46  ;;  %1313 = vmatpush3.bf16.msra.mxu1 %v1312_v54  ;;  %v567_v39 = vld [vmem:[%s2039_s5 + $0x28] sm:$0xff]  ;;  %v581_v40 = vld [vmem:[%s2039_s5 + $0x98] sm:$0xff]  ;;  %v584_v41 = vld [vmem:[%s2039_s5 + $0xb0] sm:$0xff]  ;;  %v1336_v42 = vpack.c.bf16 %v577_v37, %v574_v34 }
  0x3a   : > { %1314 = vmatprep.subr.bf16.mxu1 %v1484_v9  ;;  %v580_v43 = vld [vmem:[%s2039_s5 + $0x90] sm:$0xff]  ;;  %v1359_v44 = vpack.c.bf16 %v567_v39, %v564_v38  ;;  %v1338_v45 = vpack.c.bf16 %v584_v41, %v581_v40  ;;  %v583_v46 = vld [vmem:[%s2039_s5 + $0xa8] sm:$0xff]  ;;  %v570_v47 = vld [vmem:[%s2039_s5 + $0x40] sm:$0xff] }
  0x3b   : > { %v573_v48 = vld [vmem:[%s2039_s5 + $0x58] sm:$0xff]  ;;  %v587_v49 = vld [vmem:[%s2039_s5 + $0xc8] sm:$0xff]  ;;  %v590_v50 = vld [vmem:[%s2039_s5 + $0xe0] sm:$0xff]  ;;  %v1340_v51 = vpack.c.bf16 %v583_v46, %v580_v43 }
  0x3c   : > { %1293 = vmatpush1.bf16.msra.mxu0 %v1292_v52  ;;  %v586_v52 = vld [vmem:[%s2039_s5 + $0xc0] sm:$0xff]  ;;  %v1362_v53 = vpack.c.bf16 %v573_v48, %v570_v47  ;;  %v1342_v54 = vpack.c.bf16 %v590_v50, %v587_v49  ;;  %v576_v56 = vld [vmem:[%s2039_s5 + $0x70] sm:$0xff]  ;;  %v579_v57 = vld [vmem:[%s2039_s5 + $0x88] sm:$0xff] }
  0x3d   : > { %1295 = vmatprep.subr.bf16.mxu0 %v1294_v55  ;;  %1316 = vmatpush3.bf16.msra.mxu1 %v1315_v3  ;;  %v589_v55 = vld [vmem:[%s2039_s5 + $0xd8] sm:$0xff]  ;;  %v596_v59 = vld [vmem:[%s2039_s5 + $0x110] sm:$0xff]  ;;  %v1365_v62 = vpack.c.bf16 %v579_v57, %v576_v56  ;;  %v595_v0 = vld [vmem:[%s2039_s5 + $0x108] sm:$0xff]  ;;  %v406_v57 = vlaneseq }
  0x3e   : > { %1317 = vmatprep.subr.bf16.mxu1 %v1484_v9  ;;  %v593_v58 = vld [vmem:[%s2039_s5 + $0xf8] sm:$0xff]  ;;  %v1344_v60 = vpack.c.bf16 %v589_v55, %v586_v52  ;;  %v582_v1 = vld [vmem:[%s2039_s5 + $0xa0] sm:$0xff]  ;;  %v599_v3 = vld [vmem:[%s2039_s5 + $0x128] sm:$0xff] }
  0x3f   : > { %v1346_v63 = vpack.c.bf16 %v596_v59, %v593_v58  ;;  %v585_v2 = vld [vmem:[%s2039_s5 + $0xb8] sm:$0xff]  ;;  %v598_v6 = vld [vmem:[%s2039_s5 + $0x120] sm:$0xff]  ;;  %v588_v12 = vld [vmem:[%s2039_s5 + $0xd0] sm:$0xff]  ;;  %v407_v58 = vshrl.u32 %v406_v57, 7 }
  0x40   : > { %1297 = vmatpush1.bf16.msra.mxu0 %v1296_v61  ;;  %v592_v61 = vld [vmem:[%s2039_s5 + $0xf0] sm:$0xff]  ;;  %v1368_v7 = vpack.c.bf16 %v585_v2, %v582_v1  ;;  %v601_v11 = vld [vmem:[%s2039_s5 + $0x138] sm:$0xff]  ;;  %v591_v13 = vld [vmem:[%s2039_s5 + $0xe8] sm:$0xff] }
  0x41   : > { %1299 = vmatprep.subr.bf16.mxu0 %v1298_v4  ;;  %1319 = vmatpush3.bf16.msra.mxu1 %v1318_v16  ;;  %v602_v4 = vld [vmem:[%s2039_s5 + $0x140] sm:$0xff]  ;;  %v1348_v5 = vpack.c.bf16 %v595_v0, %v592_v61  ;;  %v608_v15 = vld [vmem:[%s2039_s5 + $0x170] sm:$0xff]  ;;  %v1352_v16 = vpack.c.bf16 %v601_v11, %v598_v6  ;;  %v1371_v18 = vpack.c.bf16 %v591_v13, %v588_v12  ;;  %v607_v20 = vld [vmem:[%s2039_s5 + $0x168] sm:$0xff]  ;;  %v408_v59 = vsub.s32 0, %v407_v58 }
  0x42   : > { %1320 = vmatprep.subr.bf16.mxu1 %v1484_v9  ;;  %v1350_v8 = vpack.c.bf16 %v602_v4, %v599_v3  ;;  %v594_v21 = vld [vmem:[%s2039_s5 + $0x100] sm:$0xff]  ;;  %v597_v22 = vld [vmem:[%s2039_s5 + $0x118] sm:$0xff]  ;;  %v600_v25 = vld [vmem:[%s2039_s5 + $0x130] sm:$0xff] }
  0x43   : > { %v606_v29 = vld [vmem:[%s2039_s5 + $0x160] sm:$0xff]  ;;  %v609_v30 = vld [vmem:[%s2039_s5 + $0x178] sm:$0xff]  ;;  %v795_v38 = vld [vmem:[%s2042_s8 + $0x28] sm:$0xff] }
  0x44   : > { %1301 = vmatpush1.bf16.msra.mxu0 %v1300_v14  ;;  %v605_v14 = vld [vmem:[%s2039_s5 + $0x158] sm:$0xff]  ;;  %v1380_v31 = vpack.c.bf16 %v609_v30, %v606_v29  ;;  %v790_v32 = vld [vmem:[%s2042_s8] sm:$0xff]  ;;  %v796_v40 = vld [vmem:[%s2042_s8 + $0x30] sm:$0xff] }
  0x45   : > { %1327 = vmatprep.subr.bf16.mxu0 %v1326_v17  ;;  %1322 = vmatpush3.bf16.msra.mxu1 %v1321_v26  ;;  %v604_v17 = vld [vmem:[%s2039_s5 + $0x150] sm:$0xff]  ;;  %v1354_v19 = vpack.c.bf16 %v608_v15, %v605_v14  ;;  %v603_v26 = vld [vmem:[%s2039_s5 + $0x148] sm:$0xff]  ;;  %v794_v37 = vld [vmem:[%s2042_s8 + $0x20] sm:$0xff] }
  0x46   : > { %1323 = vmatprep.subr.bf16.mxu1 %v1484_v9  ;;  %v1377_v28 = vpack.c.bf16 %v603_v26, %v600_v25  ;;  %v1389_v39 = vpack.c.bf16 %v795_v38, %v794_v37  ;;  %v797_v41 = vld [vmem:[%s2042_s8 + $0x38] sm:$0xff]  ;;  %v798_v43 = vld [vmem:[%s2042_s8 + $0x40] sm:$0xff]  ;;  %v800_v46 = vld [vmem:[%s2042_s8 + $0x50] sm:$0xff]  ;;  %v885_v37 = vand.u32 127, %v406_v57 }
  0x47   : > { %486 = vmatmul.mubr.f32.vlgmr.msra.gmra.mrb[0].mxu0 %v354_v23  ;;  %v801_v47 = vld [vmem:[%s2042_s8 + $0x58] sm:$0xff]  ;;  %v802_v49 = vld [vmem:[%s2042_s8 + $0x60] sm:$0xff]  ;;  %v803_v50 = vld [vmem:[%s2042_s8 + $0x68] sm:$0xff] }
  0x48   : > { %1329 = vmatpush1.bf16.msra.mxu0 %v1328_v24  ;;  %691 = vmatprep.mubr.f32.mxu0 %v1485_v10  ;;  %v1374_v24 = vpack.c.bf16 %v597_v22, %v594_v21  ;;  %v1398_v48 = vpack.c.bf16 %v801_v47, %v800_v46  ;;  %v804_v52 = vld [vmem:[%s2042_s8 + $0x70] sm:$0xff]  ;;  %v404_v61 = vld [vmem:[%s2040_s6] sm:$0x7]  ;;  %v918_v57 = vld [vmem:[%s2037_s3 + $0x58] sm:$0xff] }
  0x49   : > { %1331 = vmatprep.subr.bf16.mxu0 %v1330_v27  ;;  %1325 = vmatpush3.bf16.msra.mxu1 %v1324_v35  ;;  %v1892_v27 = vld [vmem:[#allocation2] sm:$0xff]  ;;  %v792_v35 = vld [vmem:[%s2042_s8 + $0x10] sm:$0xff] }
  0x4a   : > { %1358 = vmatprep.subr.bf16.mxu1 %v1484_v9  ;;  %v911_v47 = vld [vmem:[%s2037_s3 + $0x20] sm:$0xff] }
  0x4c   : > { %1333 = vmatpush1.bf16.msra.mxu0 %v1332_v33  ;;  %1163 = vmatmul.mubr.f32.vlgmr.msra.gmra.mrb[0].mxu1 %v354_v23  ;;  %v1356_v23 = vpack.c.bf16 %v607_v20, %v604_v17  ;;  %v791_v33 = vld [vmem:[%s2042_s8 + $0x8] sm:$0xff]  ;;  %v416_v17 = vsub.s32 2, %v407_v58 }
  0x4d   : > { %1335 = vmatprep.subr.bf16.mxu0 %v1334_v36  ;;  %1360 = vmatpush3.bf16.msra.mxu1 %v1359_v44  ;;  %v1383_v34 = vpack.c.bf16 %v791_v33, %v790_v32  ;;  %v799_v44 = vld [vmem:[%s2042_s8 + $0x48] sm:$0xff] }
  0x4e   : > { %1361 = vmatprep.subr.bf16.mxu1 %v1484_v9  ;;  %1197 = vmatprep.mubr.msk.f32.mxu1 %vm1486_vm0, %v1485_v10  ;;  %v417_v20 = vrot.slane %v404_v61, %v416_v17 }
  0x50   : > { %1337 = vmatpush1.bf16.msra.mxu0 %v1336_v42  ;;  %v1392_v42 = vpack.c.bf16 %v797_v41, %v796_v40 }
  0x51   : > { %1339 = vmatprep.subr.bf16.mxu0 %v1338_v45  ;;  %1363 = vmatpush3.bf16.msra.mxu1 %v1362_v53  ;;  %v1395_v45 = vpack.c.bf16 %v799_v44, %v798_v43  ;;  %v805_v53 = vld [vmem:[%s2042_s8 + $0x78] sm:$0xff]  ;;  %v909_v43 = vld [vmem:[%s2037_s3 + $0x10] sm:$0xff] }
  0x52   : > { %1364 = vmatprep.subr.bf16.mxu1 %v1484_v9 }
  0x54   : > { %1341 = vmatpush1.bf16.msra.mxu0 %v1340_v51  ;;  %v1401_v51 = vpack.c.bf16 %v803_v50, %v802_v49  ;;  %v913_v50 = vld [vmem:[%s2037_s3 + $0x30] sm:$0xff] }
  0x55   : > { %1343 = vmatprep.subr.bf16.mxu0 %v1342_v54  ;;  %1366 = vmatpush3.bf16.msra.mxu1 %v1365_v62  ;;  %v1404_v54 = vpack.c.bf16 %v805_v53, %v804_v52  ;;  %v412_v62 = vsub.s32 1, %v407_v58  ;;  %v915_v53 = vld [vmem:[%s2037_s3 + $0x40] sm:$0xff] }
  0x56   : > { %1367 = vmatprep.subr.bf16.mxu1 %v1484_v9 }
  0x57   : > { %v413_v1 = vrot.slane %v404_v61, %v412_v62 }
  0x58   : > { %1345 = vmatpush1.bf16.msra.mxu0 %v1344_v60  ;;  %v610_v60 = vld [vmem:[%s2041_s7] sm:$0x7] }
  0x59   : > { %1347 = vmatprep.subr.bf16.mxu0 %v1346_v63  ;;  %1369 = vmatpush3.bf16.msra.mxu1 %v1368_v7  ;;  %v409_v63 = vrot.slane %v404_v61, %v408_v59  ;;  %v615_v0 = vrot.slane %v610_v60, %v408_v59  ;;  %v619_v2 = vrot.slane %v610_v60, %v412_v62  ;;  %v919_v59 = vld [vmem:[%s2037_s3 + $0x60] sm:$0xff] }
  0x5a   : > { %1370 = vmatprep.subr.bf16.mxu1 %v1484_v9 }
  0x5b   : > { %v1430_v3 = vadd.f32 %v615_v0, %v409_v63 }
  0x5c   : > { %1349 = vmatpush1.bf16.msra.mxu0 %v1348_v5  ;;  %v1432_v5 = vadd.f32 %v619_v2, %v413_v1  ;;  %v921_v2 = vld [vmem:[%s2037_s3 + $0x70] sm:$0xff] }
  0x5d   : > { %1351 = vmatprep.subr.bf16.mxu0 %v1350_v8  ;;  %1372 = vmatpush3.bf16.msra.mxu1 %v1371_v18  ;;  %v623_v18 = vrot.slane %v610_v60, %v416_v17  ;;  %v920_v60 = vld [vmem:[%s2037_s3 + $0x68] sm:$0xff] }
  0x5e   : > { %1373 = vmatprep.subr.bf16.mxu1 %v1484_v9  ;;  %v1425_v61 = vpack.c.bf16 %v920_v60, %v919_v59 }
  0x60   : > { %1353 = vmatpush1.bf16.msra.mxu0 %v1352_v16 }
  0x61   : > { %1355 = vmatprep.subr.bf16.mxu0 %v1354_v19  ;;  %1375 = vmatpush3.bf16.msra.mxu1 %v1374_v24 }
  0x62   : > { %1376 = vmatprep.subr.bf16.mxu1 %v1484_v9 }
  0x64   : > { %1357 = vmatpush1.bf16.msra.mxu0 %v1356_v23 }
  0x65   : > { %1382 = vmatprep.subr.bf16.mxu0 %v1484_v9  ;;  %1378 = vmatpush3.bf16.msra.mxu1 %v1377_v28 }
  0x66   : > { %1379 = vmatprep.subr.bf16.mxu1 %v1484_v9 }
  0x67   : > { %692 = vmatmul.mubr.f32.vlgmr.msra.gmra.mrb[0].mxu0 %v1892_v27 }
  0x68   : > { %1232 = vmatprep.mubr.msk.f32.mxu0 %vm1486_vm0, %v1485_v10  ;;  %1384 = vmatpush3.bf16.msra.mxu0 %v1383_v34  ;;  %v1057_v34 = vld [vmem:[%s2043_s9] ss:$0 sm:$0xff] }
  0x69   : > { %1381 = vmatpush3.bf16.msra.mxu1 %v1380_v31  ;;  %1385 = vmatprep.subr.bf16.mxu0 %v1484_v9 }
  0x6a   : > { %1406 = vmatprep.subr.bf16.mxu1 %v1484_v9 }
  0x6c   : > { %1198 = vmatmul.mubr.f32.vlgmr.msra.gmra.mrb[2].mxu1 %v1892_v27 }
  0x6d   : > { %1267 = vmatprep.mubr.msk.f32.mxu1 %vm1486_vm0, %v1485_v10  ;;  %v793_v10 = vld [vmem:[%s2042_s8 + $0x18] sm:$0xff] }
  0x6e   : > { %v1386_v36 = vpack.c.bf16 %v793_v10, %v792_v35 }
  0x70   : > { %1387 = vmatpush3.bf16.msra.mxu0 %v1386_v36 }
  0x71   : > { %1388 = vmatprep.subr.bf16.mxu0 %v1484_v9 }
  0x74   : > { %1390 = vmatpush3.bf16.msra.mxu0 %v1389_v39 }
  0x75   : > { %1391 = vmatprep.subr.bf16.mxu0 %v1484_v9 }
  0x78   : > { %1393 = vmatpush3.bf16.msra.mxu0 %v1392_v42  ;;  %v908_v42 = vld [vmem:[%s2037_s3 + $0x8] sm:$0xff] }
  0x79   : > { %1394 = vmatprep.subr.bf16.mxu0 %v1484_v9 }
  0x7c   : > { %1396 = vmatpush3.bf16.msra.mxu0 %v1395_v45  ;;  %v910_v45 = vld [vmem:[%s2037_s3 + $0x18] sm:$0xff] }
  0x7d   : > { %1397 = vmatprep.subr.bf16.mxu0 %v1484_v9  ;;  %v1410_v46 = vpack.c.bf16 %v910_v45, %v909_v43 }
  0x80   : > { %1399 = vmatpush3.bf16.msra.mxu0 %v1398_v48  ;;  %v912_v48 = vld [vmem:[%s2037_s3 + $0x28] sm:$0xff] }
  0x81   : > { %1400 = vmatprep.subr.bf16.mxu0 %v1484_v9  ;;  %v1413_v49 = vpack.c.bf16 %v912_v48, %v911_v47 }
  0x84   : > { %1402 = vmatpush3.bf16.msra.mxu0 %v1401_v51  ;;  %v914_v51 = vld [vmem:[%s2037_s3 + $0x38] sm:$0xff] }
  0x85   : > { %1403 = vmatprep.subr.bf16.mxu0 %v1484_v9  ;;  %v1416_v52 = vpack.c.bf16 %v914_v51, %v913_v50 }
  0x88   : > { %1405 = vmatpush3.bf16.msra.mxu0 %v1404_v54  ;;  %v916_v54 = vld [vmem:[%s2037_s3 + $0x48] sm:$0xff] }
 0x11f   : > { %v558_v55 = vpop.f32.mrb[0].mxu1 }
 0x120   : > { %v1164_v56 = vpop.f32.mrb[1].mxu1  ;;  %v559_v24 = vadd.f32 %v558_v55, %v417_v20  ;;  %v1419_v55 = vpack.c.bf16 %v916_v54, %v915_v53 }
 0x121   : > { %v917_v56 = vld [vmem:[%s2037_s3 + $0x50] sm:$0xff] }
 0x122   : > { %v1422_v58 = vpack.c.bf16 %v918_v57, %v917_v56 }
 0x13a   : > { %v693_v4 = vpop.f32.mrb[0].mxu0 }
 0x13b   : > { %v1431_v6 = vadd.f32 %v1430_v3, %v693_v4  ;;  %v695_v7 = vpop.f32.mrb[1].mxu0  ;;  %v922_v3 = vld [vmem:[%s2037_s3 + $0x78] sm:$0xff] }
 0x13c   : > { %v1433_v11 = vadd.f32 %v1432_v5, %v695_v7  ;;  %v1428_v4 = vpack.c.bf16 %v922_v3, %v921_v2 }
 0x13d   : > { %v1055_v8 = vmul.f32 -1.442695, %v1431_v6 }
 0x13e   : > { %v1056_v12 = vmul.f32 -1.442695, %v1433_v11  ;;  %v1487_v11 = vmov 1.0  }
 0x13f   : > { %1450 = vpow2.f32 %v1055_v8  ;;  %v764_v13 = vpop.f32.mrb[2].mxu1 }
 0x140   : > { %v1199_v14 = vpop.f32.mrb[3].mxu1  ;;  %1452 = vpow2.f32 %v1056_v12  ;;  %v765_v22 = vadd.f32 %v764_v13, %v623_v18 }
 0x149   : > { %v1451_v15 = vpop.eup %1450 }
 0x14a   : > { %v772_v16 = vadd.f32 1.0, %v1451_v15  ;;  %v1453_v19 = vpop.eup %1452 }
 0x14b   : > { %v779_v21 = vadd.f32 1.0, %v1453_v19 }
 0x14c   : > { %1454 = vrcp.f32 %v772_v16 }
 0x14d   : > { %1456 = vrcp.f32 %v779_v21 }
 0x156   : > { %v1455_v23 = vpop.eup %1454 }
 0x157   : > { %v782_v25 = vmul.f32 %v1455_v23, %v765_v22  ;;  %v1457_v28 = vpop.eup %1456 }
 0x158   : > { %v785_v29 = vsub.f32 1.0, %v1457_v28  ;;  %v787_v32 = vmul.f32 %v1457_v28, %v1892_v27  ;;  %v907_v27 = vld [vmem:[%s2037_s3] sm:$0xff] }
 0x159   : > { %v783_v26 = vadd.f32 %v782_v25, %v559_v24  ;;  %v1407_v44 = vpack.c.bf16 %v908_v42, %v907_v27 }
 0x15b   : > { %1458 = vtanh.f32 %v783_v26  ;;  %1408 = vmatpush3.bf16.msra.mxu1 %v1407_v44 }
 0x15c   : > { %1409 = vmatprep.subr.bf16.mxu1 %v1484_v9 }
 0x15f   : > { %1411 = vmatpush3.bf16.msra.mxu1 %v1410_v46 }
 0x160   : > { %1412 = vmatprep.subr.bf16.mxu1 %v1484_v9 }
 0x163   : > { %1414 = vmatpush3.bf16.msra.mxu1 %v1413_v49 }
 0x164   : > { %1415 = vmatprep.subr.bf16.mxu1 %v1484_v9 }
 0x165   : > { %v1459_v30 = vpop.eup %1458 }
 0x166   : > { %v786_v31 = vmul.f32 %v1459_v30, %v785_v29 }
 0x167   : > { %1417 = vmatpush3.bf16.msra.mxu1 %v1416_v52 }
 0x168   : > { %v788_v33 = vadd.f32 %v787_v32, %v786_v31  ;;  %1418 = vmatprep.subr.bf16.mxu1 %v1484_v9 }
 0x16a   : > { %789 = vst [vmem:[#allocation2] sm:$0xff] %v788_v33  ;;  %1233 = vmatmul.mubr.f32.vlgmr.msra.gmra.mrb[2].mxu0 %v788_v33 }
 0x16b   : > { %1420 = vmatpush3.bf16.msra.mxu1 %v1419_v55 }
 0x16c   : > { %1421 = vmatprep.subr.bf16.mxu1 %v1484_v9 }
 0x16f   : > { %1423 = vmatpush3.bf16.msra.mxu1 %v1422_v58 }
 0x170   : > { %1424 = vmatprep.subr.bf16.mxu1 %v1484_v9 }
 0x173   : > { %1426 = vmatpush3.bf16.msra.mxu1 %v1425_v61 }
 0x174   : > { %1427 = vmatprep.subr.bf16.mxu1 %v1484_v9 }
 0x177   : > { %1429 = vmatpush3.bf16.msra.mxu1 %v1428_v4 }
 0x23d   : > { %v879_v35 = vpop.f32.mrb[2].mxu0 }
 0x23e   : > { %v880_v10 = vadd.f32 %v1057_v34, %v879_v35  ;;  %v1234_v36 = vpop.f32.mrb[3].mxu0 }
 0x240   : > { %883 = vst [vmem:[%s1567_s26] sm:$0xff] %v880_v10  ;;  %886 = vmax.xlane.f32.xlu0 %v880_v10 }
 0x2cd   : > { %v887_v38 = vpop.xlane.xlu0 %886 }
 0x2ce   : > { %vm888_vm1 = vcmp.eq.f32.partialorder %v880_v10, %v887_v38 }
 0x2cf   : > { %v889_v39 = vsel %vm888_vm1, %v885_v37, 128 }
 0x2d0   : > { %v891_v40 = vshra.s32 %v889_v39, 16  ;;  %v890_v62 = vand.u32 65535, %v889_v39 }
 0x2d2   : > { %v893_v41 = vcvt.s32.f32 %v891_v40  ;;  %v892_v0 = vcvt.s32.f32 %v890_v62 }
 0x2d4   : > { %894 = vmin.xlane.f32.xlu0 %v893_v41 }
 0x361   : > { %v895_v63 = vpop.xlane.xlu0 %894 }
 0x362   : > { %vm896_vm2 = vcmp.eq.f32.partialorder %v893_v41, %v895_v63  ;;  %v901_v5 = vcvt.f32.s32 %v895_v63 }
 0x363   : > { %v897_v1 = vsel %vm896_vm2, %v892_v0, inf }
 0x364   : > { %898 = vmin.xlane.f32.xlu1 %v897_v1  ;;  %v902_v7 = vshll.u32 %v901_v5, 16 }
 0x3f1   : > { %v899_v6 = vpop.xlane.xlu1 %898 }
 0x3f2   : > { %v900_v9 = vcvt.f32.s32 %v899_v6 }
 0x3f4   : > { %v903_v8 = vadd.s32 %v902_v7, %v900_v9 }
 0x3f6   : > { %vm904_vm3 = vcmp.eq.s32.totalorder %v885_v37, %v903_v8 }
 0x3f7   : > { %1268 = vmatmul.mubr.msk.f32.vlgmr.msra.gmra.mrb[4].mxu1 %vm904_vm3, %v1487_v11 }
 0x4ca   : > { %v989_v12 = vpop.f32.mrb[4].mxu1 }
 0x4cb   : > { %993 = vst [vmem:[#allocation3] sm:$0xff] %v989_v12  ;;  %v1269_v13 = vpop.f32.mrb[5].mxu1 }
 0x4cc PF: > { %s26_s18 = sadd.s32 1, %s1480_s18  }
 0x4cd   : > { %p23_p13 = scmp.ge.s32.totalorder %s26_s18, 8  }
 0x4cf   :  { %25 = sbr.rel (!%p23_p13) target bundleno = 16 (0x10), region = 90 }

</bundles_post_ra>
